<compile_context>
chip_gen: v5e
topology: v5e:2x2
jax: 0.10.0
libtpu: 0.0.40
codegen_flags: <defaults>
</compile_context>

<pallas_src>
import functools

import jax
import jax.numpy as jnp
from jax.experimental import pallas as pl
from jax.experimental.pallas import tpu as pltpu

LANE = 128                      # TPU lane width: pad feature / class / node dims to this
MXU_DTYPE = jnp.bfloat16        # MXU input dtype; accumulation stays f32
BN_EPS = 1e-5
NEG_INF = -1e30                 # bias for padded class lanes -> ignored by log_softmax


def _round_up(x, m):
    return (x + m - 1) // m * m


# ----------------------------- fused Pallas kernel ---------------------------

def _fused_sage_kernel(num_layers, fp, *refs):
    """Whole SAGE_node forward in one kernel; adj, activations and the merged
    [agg | h] scratch all stay VMEM-resident.

    refs = (adj, x, w_0, b_0, ..., w_{L-1}, b_{L-1}, out, z)
      adj : [Np, Np]      row-normalized (mean) adjacency, zero-padded, bf16
      x   : [Np, Fp]      node features, zero-padded, bf16
      w_l : [2*Fp, Fp]    vertically stacked [Wl^T ; Wr^T], BN folded in (hidden layers)
      b_l : [1, Fp]       folded bias (hidden) / bias with -1e30 in padded class lanes (final)
      out : [Np, Fp]      log_softmax output (padded; wrapper slices)
      z   : [Np, 2*Fp]    persistent bf16 scratch: z[:, :Fp] = agg, z[:, Fp:] = h
    """
    adj_ref, x_ref = refs[0], refs[1]
    layer_refs = refs[2:2 + 2 * num_layers]
    out_ref = refs[2 + 2 * num_layers]
    z_ref = refs[3 + 2 * num_layers]

    adj = adj_ref[...]
    # seed the "self" half of z with the input features (layer-0 h); no concat needed
    z_ref[:, pl.ds(fp, fp)] = x_ref[...]

    for li in range(num_layers):
        w = layer_refs[2 * li][...]
        b = layer_refs[2 * li + 1][...]
        h = z_ref[:, pl.ds(fp, fp)]
        # mean aggregation over neighbours (MXU, f32 accumulation)
        agg = jnp.dot(adj, h, preferred_element_type=jnp.float32)
        z_ref[:, pl.ds(0, fp)] = agg.astype(z_ref.dtype)
        # merged projection: [agg | h] @ [Wl^T ; Wr^T]  -> single K = 2*Fp MXU matmul
        # (good fit for the 256-deep MXU on v6e/v7x; on v5e splitting into
        #  agg @ w[:fp] + h @ w[fp:] costs the same MXU cycles and skips the agg store)
        logits = jnp.dot(z_ref[...], w, preferred_element_type=jnp.float32) + b
        if li < num_layers - 1:
            # eval-mode BatchNorm already folded into (w, b); dropout is identity in eval.
            # Epilogue stays f32: exp/max/sum ride the EUP/XLU slots (free under the MXU),
            # and v5e's VPU/EUP have no bf16 path anyway.
            z_ref[:, pl.ds(fp, fp)] = jnp.maximum(logits, 0.0).astype(z_ref.dtype)
        else:
            m = jnp.max(logits, axis=-1, keepdims=True)
            s = logits - m
            lse = jnp.log(jnp.sum(jnp.exp(s), axis=-1, keepdims=True))
            out_ref[...] = s - lse


# ------------------------------ wrappers --------------------------------------

def _vmem_spec():
    # Everything fits as a full-array VMEM block at this size (padded N = 128).
    return pl.BlockSpec(memory_space=pltpu.MemorySpace.VMEM)


def pad_adjacency(adj):
    """One-time (per graph) pad + bf16 cast of the mean adjacency — hoisted out of
    the per-forward path since adj is static.

    Padded rows/columns are EXACTLY ZERO; this is what keeps the garbage in padded
    h rows (relu(bias) != 0 after the first hidden layer) from leaking into real
    rows' aggregation.  Do not add self-loops after this padding.
    """
    n = adj.shape[0]
    n_pad = _round_up(n, LANE)
    return jnp.pad(adj, ((0, n_pad - n), (0, n_pad - n))).astype(MXU_DTYPE)


def fold_and_pad_params(params, *, training=False):
    """Fold eval-mode BN into the SAGEConv weights, pre-transpose ([in, out]), stack
    Wl^T/Wr^T vertically, and zero-pad every feature/class dim to one common
    lane-aligned width Fp (so the single [Np, 2*Fp] scratch serves every layer)."""
    if training:
        # BN folding + identity dropout are only valid in eval mode.
        raise NotImplementedError("SAGE_node Pallas kernel implements eval mode only")

    dims = []
    for p in params["hidden"]:
        dims += [p["wl"].shape[1], p["wl"].shape[0]]
    dims += [params["final"]["wl"].shape[1], params["final"]["wl"].shape[0]]
    fp = _round_up(max(dims), LANE)

    def pack(wl, wr, bias, pad_bias_value):
        # wl, wr: [out, in] (torch Linear layout); bias: [1, out]
        out_d, in_d = wl.shape
        pad_w = lambda w: jnp.pad(w.T, ((0, fp - in_d), (0, fp - out_d)))
        w_stacked = jnp.concatenate([pad_w(wl), pad_w(wr)], axis=0)        # [2*fp, fp]
        b_pad = jnp.pad(bias, ((0, 0), (0, fp - out_d)),
                        constant_values=pad_bias_value)
        return w_stacked.astype(MXU_DTYPE), b_pad.astype(jnp.float32)

    layers = []
    for p in params["hidden"]:
        s = p["gamma"] * jax.lax.rsqrt(p["var"] + BN_EPS)                  # [1, out]
        bias = (p["bl"] - p["mean"]) * s + p["beta"]
        # scale output channels of both linear maps by the BN scale
        layers.append(pack(p["wl"] * s.T, p["wr"] * s.T, bias, 0.0))
    pfin = params["final"]
    layers.append(pack(pfin["wl"], pfin["wr"], pfin["bl"], NEG_INF))
    return layers, fp


@functools.partial(jax.jit, static_argnames=("out_ch", "fp"))
def sage_node_forward(x, adj_p, folded_layers, *, out_ch, fp):
    n, in_ch = x.shape
    n_pad = adj_p.shape[0]
    num_layers = len(folded_layers)

    x_p = jnp.pad(x, ((0, n_pad - n), (0, fp - in_ch))).astype(MXU_DTYPE)

    flat = [a for wb in folded_layers for a in wb]
    args = (adj_p, x_p, *flat)

    # VMEM residency: adj (2*Np^2 B bf16) + z/x/out + weights must fit the SCOPED
    # VMEM limit.  Np = 128 here is trivial.  Ceilings differ per chip: on v7x
    # (64 MiB physical / 32 MiB scoped) dense bf16 adj stops fitting around
    # Np ~ 4-5K — roughly half the Np tolerable on v5e/v6e (128 MiB).  For larger
    # graphs switch to a row-tiled grid: BlockSpec((TM, TK), lambda i, k: (i, k))
    # streaming adj with the K axis last ("arbitrary") and the row axis "parallel"
    # (uses both v7x TensorCores), TM/TK >= 512, vmem_limit_bytes sized to the real
    # buffers, and pipeline_mode=pl.Buffered(3) on the adj spec if the DMA is exposed.
    # TODO(synk): many-small-graph deployments should batch graphs (leading grid axis
    #             or block-diagonal adj) — at Np=128 this call is launch-overhead-bound.
    kernel = functools.partial(_fused_sage_kernel, num_layers, fp)
    out_p = pl.pallas_call(
        kernel,
        out_shape=jax.ShapeDtypeStruct((n_pad, fp), jnp.float32),
        in_specs=[_vmem_spec() for _ in args],
        out_specs=_vmem_spec(),
        scratch_shapes=[pltpu.VMEM((n_pad, 2 * fp), MXU_DTYPE)],
    )(*args)
    return out_p[:n, :out_ch]


# --------------------------- f32 JAX reference ---------------------------------

def sage_node_reference(x, adj, params):
    h = x
    for p in params["hidden"]:
        lin = (adj @ h) @ p["wl"].T + p["bl"] + h @ p["wr"].T
        h = (lin - p["mean"]) * jax.lax.rsqrt(p["var"] + BN_EPS) * p["gamma"] + p["beta"]
        h = jnp.maximum(h, 0.0)
    pfin = params["final"]
    logits = (adj @ h) @ pfin["wl"].T + pfin["bl"] + h @ pfin["wr"].T
    return jax.nn.log_softmax(logits, axis=-1)


# --------------------------- deterministic init -------------------------------

def init_params(key, in_channels, hidden_channels, out_channels, num_layers):
    dims = [in_channels] + [hidden_channels] * (num_layers - 1) + [out_channels]
    hidden = []
    keys = jax.random.split(key, num_layers * 4)
    k_idx = 0

    def lin(k, fan_out, fan_in):
        scale = 1.0 / jnp.sqrt(jnp.float32(fan_in))
        return jax.random.uniform(k, (fan_out, fan_in), jnp.float32, -scale, scale)

    for li in range(num_layers - 1):
        d_in, d_out = dims[li], dims[li + 1]
        wl = lin(keys[k_idx], d_out, d_in); k_idx += 1
        wr = lin(keys[k_idx], d_out, d_in); k_idx += 1
        bl = jax.random.uniform(keys[k_idx], (1, d_out), jnp.float32, -0.1, 0.1); k_idx += 1
        kg = keys[k_idx]; k_idx += 1
        gamma = 1.0 + 0.1 * jax.random.normal(kg, (1, d_out), jnp.float32)
        beta = 0.05 * jnp.ones((1, d_out), jnp.float32)
        mean = 0.01 * jnp.arange(d_out, dtype=jnp.float32).reshape(1, d_out)
        var = jnp.ones((1, d_out), jnp.float32) * 1.5
        hidden.append(dict(wl=wl, wr=wr, bl=bl,
                           gamma=gamma, beta=beta, mean=mean, var=var))

    d_in, d_out = dims[-2], dims[-1]
    wl = lin(keys[k_idx], d_out, d_in); k_idx += 1
    wr = lin(keys[k_idx], d_out, d_in); k_idx += 1
    bl = jax.random.uniform(keys[k_idx], (1, d_out), jnp.float32, -0.1, 0.1); k_idx += 1
    final = dict(wl=wl, wr=wr, bl=bl)
    return dict(hidden=hidden, final=final)


def make_mean_adj(key, n):
    # deterministic random graph; row-normalized (mean aggregation over neighbors)
    mask = (jax.random.uniform(key, (n, n)) < 0.15).astype(jnp.float32)
    mask = mask * (1.0 - jnp.eye(n, dtype=jnp.float32))  # no self loops
    deg = jnp.sum(mask, axis=1, keepdims=True)
    # isolated nodes fall back to a self loop so the mean is well defined
    mask = jnp.where(deg > 0, mask, jnp.eye(n, dtype=jnp.float32))
    deg = jnp.maximum(jnp.sum(mask, axis=1, keepdims=True), 1.0)
    return mask / deg


# --------------------------------- main ---------------------------------------

if __name__ == "__main__":
    N = 64               # number of graph nodes
    IN_CH = 16
    HIDDEN_CH = 32
    OUT_CH = 8
    NUM_LAYERS = 3
    # dropout p is irrelevant in eval mode (identity)

    root = jax.random.PRNGKey(0)
    k_x, k_adj, k_p = jax.random.split(root, 3)

    x = jax.random.normal(k_x, (N, IN_CH), jnp.float32)
    adj = make_mean_adj(k_adj, N)
    params = init_params(k_p, IN_CH, HIDDEN_CH, OUT_CH, NUM_LAYERS)

    # hoisted one-time prep: fold BN + pad/stack weights, pad/cast adjacency
    folded, fp = fold_and_pad_params(params)
    adj_p = pad_adjacency(adj)

    out = sage_node_forward(x, adj_p, folded, out_ch=OUT_CH, fp=fp)
    out = jax.block_until_ready(out)

    assert out.shape == (N, OUT_CH), out.shape
    # rows of log_softmax must exp-sum to 1 (padded class lanes contribute 0)
    row_sums = jnp.exp(out).sum(axis=-1)
    assert bool(jnp.all(jnp.abs(row_sums - 1.0) < 1e-3)), row_sums

    # validate against the f32 JAX reference.
    # TODO(synk): tolerance is loose because inputs/activations ride the MXU in bf16;
    #             keep adj / first-layer aggregation in f32 if calibrated log-probs matter.
    ref = sage_node_reference(x, adj, params)
    assert bool(jnp.max(jnp.abs(out - ref)) < 0.3), float(jnp.max(jnp.abs(out - ref)))

    print("KERNEL_OK")
</pallas_src>

<mosaic_0001>
module attributes {stable_mosaic.version = 11 : i64} {
  func.func @_fused_sage_kernel(%arg0: memref<128x128xbf16, #tpu.memory_space<vmem>>, %arg1: memref<128x128xbf16, #tpu.memory_space<vmem>>, %arg2: memref<256x128xbf16, #tpu.memory_space<vmem>>, %arg3: memref<1x128xf32, #tpu.memory_space<vmem>>, %arg4: memref<256x128xbf16, #tpu.memory_space<vmem>>, %arg5: memref<1x128xf32, #tpu.memory_space<vmem>>, %arg6: memref<256x128xbf16, #tpu.memory_space<vmem>>, %arg7: memref<1x128xf32, #tpu.memory_space<vmem>>, %arg8: memref<128x128xf32, #tpu.memory_space<vmem>>, %arg9: memref<128x256xbf16, #tpu.memory_space<vmem>>) attributes {dimension_semantics = [], scalar_prefetch = 0 : i64, scratch_operands = 1 : i64, tpu.core_type = #tpu.core_type<tc>} {
    %c0 = arith.constant 0 : index
    %c0_0 = arith.constant 0 : index
    %0 = vector.load %arg0[%c0, %c0_0] : memref<128x128xbf16, #tpu.memory_space<vmem>>, vector<128x128xbf16>
    %c0_1 = arith.constant 0 : index
    %c0_2 = arith.constant 0 : index
    %1 = vector.load %arg1[%c0_1, %c0_2] : memref<128x128xbf16, #tpu.memory_space<vmem>>, vector<128x128xbf16>
    %c0_3 = arith.constant 0 : index
    %c128 = arith.constant 128 : index
    %2 = vector.load %arg9[%c0_3, %c128] : memref<128x256xbf16, #tpu.memory_space<vmem>>, vector<128x128xbf16>
    tpu.vector_store %arg9[%c0_3, %c128], %1 {strides = array<i32>} : memref<128x256xbf16, #tpu.memory_space<vmem>>, vector<128x128xbf16>,
    %c0_4 = arith.constant 0 : index
    %c0_5 = arith.constant 0 : index
    %3 = vector.load %arg2[%c0_4, %c0_5] : memref<256x128xbf16, #tpu.memory_space<vmem>>, vector<256x128xbf16>
    %c0_6 = arith.constant 0 : index
    %c0_7 = arith.constant 0 : index
    %4 = vector.load %arg3[%c0_6, %c0_7] : memref<1x128xf32, #tpu.memory_space<vmem>>, vector<1x128xf32>
    %c0_8 = arith.constant 0 : index
    %c128_9 = arith.constant 128 : index
    %5 = vector.load %arg9[%c0_8, %c128_9] : memref<128x256xbf16, #tpu.memory_space<vmem>>, vector<128x128xbf16>
    %cst = arith.constant dense<0.000000e+00> : vector<128x128xf32>
    %6 = tpu.matmul %0, %5, %cst {dimension_numbers = #tpu.dot_dimension_numbers<[1], [0], [0], [1], [0, 0, 1, 1], [], []>} : vector<128x128xbf16>, vector<128x128xbf16>, vector<128x128xf32> -> vector<128x128xf32>
    %7 = arith.truncf %6 : vector<128x128xf32> to vector<128x128xbf16>
    %c0_10 = arith.constant 0 : index
    %c0_11 = arith.constant 0 : index
    %8 = vector.load %arg9[%c0_10, %c0_11] : memref<128x256xbf16, #tpu.memory_space<vmem>>, vector<128x128xbf16>
    tpu.vector_store %arg9[%c0_10, %c0_11], %7 {strides = array<i32>} : memref<128x256xbf16, #tpu.memory_space<vmem>>, vector<128x128xbf16>,
    %c0_12 = arith.constant 0 : index
    %c0_13 = arith.constant 0 : index
    %9 = vector.load %arg9[%c0_12, %c0_13] : memref<128x256xbf16, #tpu.memory_space<vmem>>, vector<128x256xbf16>
    %cst_14 = arith.constant dense<0.000000e+00> : vector<128x128xf32>
    %10 = tpu.matmul %9, %3, %cst_14 {dimension_numbers = #tpu.dot_dimension_numbers<[1], [0], [0], [1], [0, 0, 1, 1], [], []>} : vector<128x256xbf16>, vector<256x128xbf16>, vector<128x128xf32> -> vector<128x128xf32>
    %11 = vector.broadcast %4 : vector<1x128xf32> to vector<128x128xf32>
    %12 = arith.addf %10, %11 : vector<128x128xf32>
    %cst_15 = arith.constant 0.000000e+00 : f32
    %13 = vector.broadcast %cst_15 : f32 to vector<128x128xf32>
    %14 = arith.maximumf %12, %13 : vector<128x128xf32>
    %15 = arith.truncf %14 : vector<128x128xf32> to vector<128x128xbf16>
    %c0_16 = arith.constant 0 : index
    %c128_17 = arith.constant 128 : index
    %16 = vector.load %arg9[%c0_16, %c128_17] : memref<128x256xbf16, #tpu.memory_space<vmem>>, vector<128x128xbf16>
    tpu.vector_store %arg9[%c0_16, %c128_17], %15 {strides = array<i32>} : memref<128x256xbf16, #tpu.memory_space<vmem>>, vector<128x128xbf16>,
    %c0_18 = arith.constant 0 : index
    %c0_19 = arith.constant 0 : index
    %17 = vector.load %arg4[%c0_18, %c0_19] : memref<256x128xbf16, #tpu.memory_space<vmem>>, vector<256x128xbf16>
    %c0_20 = arith.constant 0 : index
    %c0_21 = arith.constant 0 : index
    %18 = vector.load %arg5[%c0_20, %c0_21] : memref<1x128xf32, #tpu.memory_space<vmem>>, vector<1x128xf32>
    %c0_22 = arith.constant 0 : index
    %c128_23 = arith.constant 128 : index
    %19 = vector.load %arg9[%c0_22, %c128_23] : memref<128x256xbf16, #tpu.memory_space<vmem>>, vector<128x128xbf16>
    %cst_24 = arith.constant dense<0.000000e+00> : vector<128x128xf32>
    %20 = tpu.matmul %0, %19, %cst_24 {dimension_numbers = #tpu.dot_dimension_numbers<[1], [0], [0], [1], [0, 0, 1, 1], [], []>} : vector<128x128xbf16>, vector<128x128xbf16>, vector<128x128xf32> -> vector<128x128xf32>
    %21 = arith.truncf %20 : vector<128x128xf32> to vector<128x128xbf16>
    %c0_25 = arith.constant 0 : index
    %c0_26 = arith.constant 0 : index
    %22 = vector.load %arg9[%c0_25, %c0_26] : memref<128x256xbf16, #tpu.memory_space<vmem>>, vector<128x128xbf16>
    tpu.vector_store %arg9[%c0_25, %c0_26], %21 {strides = array<i32>} : memref<128x256xbf16, #tpu.memory_space<vmem>>, vector<128x128xbf16>,
    %c0_27 = arith.constant 0 : index
    %c0_28 = arith.constant 0 : index
    %23 = vector.load %arg9[%c0_27, %c0_28] : memref<128x256xbf16, #tpu.memory_space<vmem>>, vector<128x256xbf16>
    %cst_29 = arith.constant dense<0.000000e+00> : vector<128x128xf32>
    %24 = tpu.matmul %23, %17, %cst_29 {dimension_numbers = #tpu.dot_dimension_numbers<[1], [0], [0], [1], [0, 0, 1, 1], [], []>} : vector<128x256xbf16>, vector<256x128xbf16>, vector<128x128xf32> -> vector<128x128xf32>
    %25 = vector.broadcast %18 : vector<1x128xf32> to vector<128x128xf32>
    %26 = arith.addf %24, %25 : vector<128x128xf32>
    %cst_30 = arith.constant 0.000000e+00 : f32
    %27 = vector.broadcast %cst_30 : f32 to vector<128x128xf32>
    %28 = arith.maximumf %26, %27 : vector<128x128xf32>
    %29 = arith.truncf %28 : vector<128x128xf32> to vector<128x128xbf16>
    %c0_31 = arith.constant 0 : index
    %c128_32 = arith.constant 128 : index
    %30 = vector.load %arg9[%c0_31, %c128_32] : memref<128x256xbf16, #tpu.memory_space<vmem>>, vector<128x128xbf16>
    tpu.vector_store %arg9[%c0_31, %c128_32], %29 {strides = array<i32>} : memref<128x256xbf16, #tpu.memory_space<vmem>>, vector<128x128xbf16>,
    %c0_33 = arith.constant 0 : index
    %c0_34 = arith.constant 0 : index
    %31 = vector.load %arg6[%c0_33, %c0_34] : memref<256x128xbf16, #tpu.memory_space<vmem>>, vector<256x128xbf16>
    %c0_35 = arith.constant 0 : index
    %c0_36 = arith.constant 0 : index
    %32 = vector.load %arg7[%c0_35, %c0_36] : memref<1x128xf32, #tpu.memory_space<vmem>>, vector<1x128xf32>
    %c0_37 = arith.constant 0 : index
    %c128_38 = arith.constant 128 : index
    %33 = vector.load %arg9[%c0_37, %c128_38] : memref<128x256xbf16, #tpu.memory_space<vmem>>, vector<128x128xbf16>
    %cst_39 = arith.constant dense<0.000000e+00> : vector<128x128xf32>
    %34 = tpu.matmul %0, %33, %cst_39 {dimension_numbers = #tpu.dot_dimension_numbers<[1], [0], [0], [1], [0, 0, 1, 1], [], []>} : vector<128x128xbf16>, vector<128x128xbf16>, vector<128x128xf32> -> vector<128x128xf32>
    %35 = arith.truncf %34 : vector<128x128xf32> to vector<128x128xbf16>
    %c0_40 = arith.constant 0 : index
    %c0_41 = arith.constant 0 : index
    %36 = vector.load %arg9[%c0_40, %c0_41] : memref<128x256xbf16, #tpu.memory_space<vmem>>, vector<128x128xbf16>
    tpu.vector_store %arg9[%c0_40, %c0_41], %35 {strides = array<i32>} : memref<128x256xbf16, #tpu.memory_space<vmem>>, vector<128x128xbf16>,
    %c0_42 = arith.constant 0 : index
    %c0_43 = arith.constant 0 : index
    %37 = vector.load %arg9[%c0_42, %c0_43] : memref<128x256xbf16, #tpu.memory_space<vmem>>, vector<128x256xbf16>
    %cst_44 = arith.constant dense<0.000000e+00> : vector<128x128xf32>
    %38 = tpu.matmul %37, %31, %cst_44 {dimension_numbers = #tpu.dot_dimension_numbers<[1], [0], [0], [1], [0, 0, 1, 1], [], []>} : vector<128x256xbf16>, vector<256x128xbf16>, vector<128x128xf32> -> vector<128x128xf32>
    %39 = vector.broadcast %32 : vector<1x128xf32> to vector<128x128xf32>
    %40 = arith.addf %38, %39 : vector<128x128xf32>
    %cst_45 = arith.constant dense<0xFF800000> : vector<128xf32>
    %41 = vector.multi_reduction <maximumf>, %40, %cst_45 [1] : vector<128x128xf32> to vector<128xf32>
    %42 = vector.shape_cast %41 : vector<128xf32> to vector<128x1xf32>
    %43 = vector.broadcast %42 : vector<128x1xf32> to vector<128x128xf32>
    %44 = arith.subf %40, %43 : vector<128x128xf32>
    %45 = math.exp %44 : vector<128x128xf32>
    %cst_46 = arith.constant dense<0.000000e+00> : vector<128xf32>
    %46 = vector.multi_reduction <add>, %45, %cst_46 [1] : vector<128x128xf32> to vector<128xf32>
    %47 = vector.shape_cast %46 : vector<128xf32> to vector<128x1xf32>
    %48 = math.log %47 : vector<128x1xf32>
    %49 = vector.broadcast %48 : vector<128x1xf32> to vector<128x128xf32>
    %50 = arith.subf %44, %49 : vector<128x128xf32>
    %c0_47 = arith.constant 0 : index
    %c0_48 = arith.constant 0 : index
    %51 = vector.load %arg8[%c0_47, %c0_48] : memref<128x128xf32, #tpu.memory_space<vmem>>, vector<128x128xf32>
    tpu.vector_store %arg8[%c0_47, %c0_48], %50 {strides = array<i32>} : memref<128x128xf32, #tpu.memory_space<vmem>>, vector<128x128xf32>,
    return
  }
}

</mosaic_0001>

<bundles_post_ra>
// kernel: sage_node_forward.1
= control target key start
LH: loop header
LB: loop body
LE: loop exit
PB: predicated region body
PF: predicated region fallthrough
CT: control target
= control target key end

     0   :  { %13 = vsyncpa [#allocation4], 0  ;;  %s3109_s0 = inlined_call_operand.hbm [shape: bf16[128,128], index: 0, kind: input, shape index: {}]   ;;  %s3110_s1 = inlined_call_operand.vmem [shape: bf16[128,128], index: 1, kind: input, shape index: {}]   ;;  %s3111_s2 = inlined_call_operand.vmem [shape: bf16[256,128], index: 2, kind: input, shape index: {}]   ;;  %s3112_s3 = inlined_call_operand.vmem [shape: f32[1,128], index: 3, kind: input, shape index: {}]   ;;  %s3113_s4 = inlined_call_operand.hbm [shape: bf16[256,128], index: 4, kind: input, shape index: {}]   ;;  %s3114_s5 = inlined_call_operand.vmem [shape: f32[1,128], index: 5, kind: input, shape index: {}]   ;;  %s3115_s6 = inlined_call_operand.hbm [shape: bf16[256,128], index: 6, kind: input, shape index: {}]   ;;  %s3116_s7 = inlined_call_operand.vmem [shape: f32[1,128], index: 7, kind: input, shape index: {}]   ;;  %s3117_s8 = inlined_call_operand.vmem [shape: f32[128,128], index: 8, kind: output, shape index: {}]  }
   0x1   :  { %14 = vsyncpa [#allocation6], 0  ;;  %s38_s29 = sshll.u32 %s3113_s4, 4  ;;  %s2683_s30 = smov [#allocation5]   ;;  %s39_s29 = int_to_ptr.hbm [resolvable:$true] %s38_s29 }
   0x2   :  { %s40_s9 = sshll.u32 %s2683_s30, 4  ;;  %s19_s12 = sshll.u32 %s3109_s0, 4  ;;  %s41_s9 = int_to_ptr.vmem [resolvable:$true] %s40_s9  ;;  %s20_s12 = int_to_ptr.hbm [resolvable:$true] %s19_s12 }
   0x3   :  { %s2684_s13 = smov 64   ;;  %s2685_s14 = smov 4  }
   0x4   :  { %46 = dma.hbm_to_vmem [thread:$0]  %s39_s29, 2048, %s41_s9, [#allocation6], %s2684_s13, %s2684_s13, %s2685_s14  }
   0x5   :  { %s2686_s15 = smov [#allocation3]   ;;  %s53_s19 = sshll.u32 %s3115_s6, 4  ;;  %s54_s19 = int_to_ptr.hbm [resolvable:$true] %s53_s19 }
   0x6   :  { %s21_s16 = sshll.u32 %s2686_s15, 4  ;;  %s2687_s4 = smov [#allocation7]   ;;  %s22_s16 = int_to_ptr.vmem [resolvable:$true] %s21_s16 }
   0x7   :  { %27 = dma.hbm_to_vmem [thread:$0]  %s20_s12, 1024, %s22_s16, [#allocation4], %s2684_s13, %s2684_s13, %s2685_s14  }
   0x8   :  { %s55_s20 = sshll.u32 %s2687_s4, 4  ;;  %s56_s20 = int_to_ptr.vmem [resolvable:$true] %s55_s20 }
   0x9   :  { %61 = dma.hbm_to_vmem [thread:$0]  %s54_s19, 2048, %s56_s20, [#allocation6], %s2684_s13, %s2684_s13, %s2685_s14  }
   0xa   :  { %2679 = dma.done.wait [#allocation4], 1024  }
   0xb   :  { %2680 = vsyncadd [#allocation4], 4294966272 }
   0xc   :  { %2681 = dma.done.wait [#allocation6], 4096  }
   0xd   :  { %2682 = vsyncadd [#allocation6], 4294963200  ;;  %v106_v0 = vld [vmem:[%s3110_s1 + $0x38] sm:$0xf]  ;;  %v107_v1 = vld [vmem:[%s3110_s1 + $0x3c] sm:$0xf] }
   0xe   :  { %v104_v2 = vld [vmem:[%s3110_s1 + $0x30] sm:$0xf]  ;;  %122 = vst [vmem:[#allocation2 + $0x74] sm:$0xf] %v106_v0  ;;  %v105_v3 = vld [vmem:[%s3110_s1 + $0x34] sm:$0xf] }
   0xf   :  { %123 = vst [vmem:[#allocation2 + $0x7c] sm:$0xf] %v107_v1  ;;  %v102_v4 = vld [vmem:[%s3110_s1 + $0x28] sm:$0xf]  ;;  %v103_v5 = vld [vmem:[%s3110_s1 + $0x2c] sm:$0xf] }
  0x10   :  { %120 = vst [vmem:[#allocation2 + $0x64] sm:$0xf] %v104_v2  ;;  %v100_v6 = vld [vmem:[%s3110_s1 + $0x20] sm:$0xf]  ;;  %v101_v7 = vld [vmem:[%s3110_s1 + $0x24] sm:$0xf] }
  0x11   :  { %121 = vst [vmem:[#allocation2 + $0x6c] sm:$0xf] %v105_v3  ;;  %v98_v8 = vld [vmem:[%s3110_s1 + $0x18] sm:$0xf]  ;;  %v99_v9 = vld [vmem:[%s3110_s1 + $0x1c] sm:$0xf] }
  0x12   :  { %118 = vst [vmem:[#allocation2 + $0x54] sm:$0xf] %v102_v4  ;;  %v96_v10 = vld [vmem:[%s3110_s1 + $0x10] sm:$0xf]  ;;  %v97_v11 = vld [vmem:[%s3110_s1 + $0x14] sm:$0xf] }
  0x13   :  { %119 = vst [vmem:[#allocation2 + $0x5c] sm:$0xf] %v103_v5  ;;  %v94_v13 = vld [vmem:[%s3110_s1 + $0x8] sm:$0xf]  ;;  %v95_v18 = vld [vmem:[%s3110_s1 + $0xc] sm:$0xf] }
  0x14   :  { %116 = vst [vmem:[#allocation2 + $0x44] sm:$0xf] %v100_v6  ;;  %v92_v20 = vld [vmem:[%s3110_s1] sm:$0xf]  ;;  %v93_v21 = vld [vmem:[%s3110_s1 + $0x4] sm:$0xf] }
  0x15   :  { %v1925_v12 = vld [vmem:[#allocation2 + $0x74] sm:$0xf]  ;;  %117 = vst [vmem:[#allocation2 + $0x4c] sm:$0xf] %v101_v7  ;;  %v2398_v40 = vld [vmem:[%s3111_s2 + $0x78] sm:$0xff]  ;;  %v2796_v42 = vld [vmem:[#allocation3] sm:$0xff] }
  0x16   :  { %v2406_v14 = vld [vmem:[#allocation2 + $0x78] sm:$0xf0]  ;;  %114 = vst [vmem:[#allocation2 + $0x34] sm:$0xf] %v98_v8  ;;  %v2798_v43 = vld [vmem:[#allocation3 + $0x10] sm:$0xff]  ;;  %v2800_v44 = vld [vmem:[#allocation3 + $0x20] sm:$0xff] }
  0x17   :  { %v1926_v15 = vor.u32 %v2406_v14, %v1925_v12  ;;  %v1921_v16 = vld [vmem:[#allocation2 + $0x64] sm:$0xf]  ;;  %115 = vst [vmem:[#allocation2 + $0x3c] sm:$0xf] %v99_v9  ;;  %v2390_v41 = vld [vmem:[%s3111_s2 + $0x38] sm:$0xff]  ;;  %v2802_v45 = vld [vmem:[#allocation3 + $0x30] sm:$0xff] }
  0x18   :  { %v2405_v17 = vld [vmem:[#allocation2 + $0x68] sm:$0xf0]  ;;  %112 = vst [vmem:[#allocation2 + $0x24] sm:$0xf] %v96_v10  ;;  %v2397_v46 = vld [vmem:[%s3111_s2 + $0x70] sm:$0xff]  ;;  %v2395_v50 = vld [vmem:[%s3111_s2 + $0x60] sm:$0xff] }
  0x19   :  { %269 = vmatpush.bf16.msra.mxu0 %v1926_v15  ;;  %v1922_v19 = vor.u32 %v2405_v17, %v1921_v16  ;;  %113 = vst [vmem:[#allocation2 + $0x2c] sm:$0xf] %v97_v11  ;;  %2503 = vmatpush.bf16.msra.mxu1 %v1926_v15  ;;  %v1917_v22 = vld [vmem:[#allocation2 + $0x54] sm:$0xf]  ;;  %v2396_v48 = vld [vmem:[%s3111_s2 + $0x68] sm:$0xff]  ;;  %v2394_v51 = vld [vmem:[%s3111_s2 + $0x58] sm:$0xff] }
  0x1a   :  { %v2404_v23 = vld [vmem:[#allocation2 + $0x58] sm:$0xf0]  ;;  %110 = vst [vmem:[#allocation2 + $0x14] sm:$0xf] %v94_v13  ;;  %2504 = vmatpush.bf16.msra.mxu2 %v1926_v15  ;;  %2505 = vmatpush.bf16.msra.mxu3 %v1926_v15  ;;  %v2389_v47 = vld [vmem:[%s3111_s2 + $0x30] sm:$0xff]  ;;  %v2388_v49 = vld [vmem:[%s3111_s2 + $0x28] sm:$0xff] }
  0x1b   :  { %111 = vst [vmem:[#allocation2 + $0x1c] sm:$0xf] %v95_v18  ;;  %v1918_v24 = vor.u32 %v2404_v23, %v1917_v22  ;;  %v1913_v25 = vld [vmem:[#allocation2 + $0x44] sm:$0xf]  ;;  %v2826_v52 = vld [vmem:[#allocation3 + $0x8] sm:$0xff]  ;;  %v2828_v53 = vld [vmem:[#allocation3 + $0x18] sm:$0xff] }
  0x1c   :  { %108 = vst [vmem:[#allocation2 + $0x4] sm:$0xf] %v92_v20  ;;  %v2403_v26 = vld [vmem:[#allocation2 + $0x48] sm:$0xf0]  ;;  %v2832_v55 = vld [vmem:[#allocation3 + $0x38] sm:$0xff]  ;;  %v2393_v56 = vld [vmem:[%s3111_s2 + $0x50] sm:$0xff] }
  0x1d   :  { %270 = vmatpush.bf16.msra.mxu0 %v1922_v19  ;;  %2506 = vmatpush.bf16.msra.mxu1 %v1922_v19  ;;  %109 = vst [vmem:[#allocation2 + $0xc] sm:$0xf] %v93_v21  ;;  %v1914_v27 = vor.u32 %v2403_v26, %v1913_v25  ;;  %v1909_v28 = vld [vmem:[#allocation2 + $0x34] sm:$0xf]  ;;  %v2830_v54 = vld [vmem:[#allocation3 + $0x28] sm:$0xff]  ;;  %v2387_v57 = vld [vmem:[%s3111_s2 + $0x20] sm:$0xff] }
  0x1e   :  { %2507 = vmatpush.bf16.msra.mxu2 %v1922_v19  ;;  %2508 = vmatpush.bf16.msra.mxu3 %v1922_v19  ;;  %v2402_v29 = vld [vmem:[#allocation2 + $0x38] sm:$0xf0]  ;;  %v2392_v58 = vld [vmem:[%s3111_s2 + $0x48] sm:$0xff]  ;;  %v2391_v60 = vld [vmem:[%s3111_s2 + $0x40] sm:$0xff] }
  0x1f   :  { %v1910_v30 = vor.u32 %v2402_v29, %v1909_v28  ;;  %v1905_v31 = vld [vmem:[#allocation2 + $0x24] sm:$0xf]  ;;  %v2386_v59 = vld [vmem:[%s3111_s2 + $0x18] sm:$0xff]  ;;  %v2385_v0 = vld [vmem:[%s3111_s2 + $0x10] sm:$0xff] }
  0x20   :  { %v2401_v32 = vld [vmem:[#allocation2 + $0x28] sm:$0xf0]  ;;  %v2383_v2 = vld [vmem:[%s3111_s2] sm:$0xff]  ;;  %v2413_v25 = vld [vmem:[#allocation2 + $0x34] sm:$0xf] }
  0x21   :  { %271 = vmatpush.bf16.msra.mxu0 %v1918_v24  ;;  %2509 = vmatpush.bf16.msra.mxu1 %v1918_v24  ;;  %v1906_v33 = vor.u32 %v2401_v32, %v1905_v31  ;;  %v1901_v34 = vld [vmem:[#allocation2 + $0x14] sm:$0xf]  ;;  %v2384_v1 = vld [vmem:[%s3111_s2 + $0x8] sm:$0xff]  ;;  %v2411_v10 = vld [vmem:[#allocation2 + $0x24] sm:$0xf] }
  0x22   :  { %2510 = vmatpush.bf16.msra.mxu2 %v1918_v24  ;;  %2511 = vmatpush.bf16.msra.mxu3 %v1918_v24  ;;  %v2400_v35 = vld [vmem:[#allocation2 + $0x18] sm:$0xf0]  ;;  %v2409_v3 = vld [vmem:[#allocation2 + $0x14] sm:$0xf]  ;;  %v1947_v11 = vld [vmem:[#allocation2 + $0x28] sm:$0xf0] }
  0x23   :  { %v1902_v36 = vor.u32 %v2400_v35, %v1901_v34  ;;  %v1897_v37 = vld [vmem:[#allocation2 + $0x4] sm:$0xf]  ;;  %v1939_v4 = vld [vmem:[#allocation2 + $0x18] sm:$0xf0]  ;;  %v1950_v12 = vor.u32 %v2411_v10, %v1947_v11 }
  0x24   :  { %v2399_v38 = vld [vmem:[#allocation2 + $0x8] sm:$0xf0]  ;;  %v2407_v61 = vld [vmem:[#allocation2 + $0x4] sm:$0xf]  ;;  %v1942_v5 = vor.u32 %v2409_v3, %v1939_v4  ;;  %v1955_v26 = vld [vmem:[#allocation2 + $0x38] sm:$0xf0] }
  0x25   :  { %272 = vmatpush.bf16.msra.mxu0 %v1914_v27  ;;  %2512 = vmatpush.bf16.msra.mxu1 %v1914_v27  ;;  %v1898_v39 = vor.u32 %v2399_v38, %v1897_v37  ;;  %v1931_v62 = vld [vmem:[#allocation2 + $0x8] sm:$0xf0]  ;;  %v1958_v28 = vor.u32 %v2413_v25, %v1955_v26  ;;  %v2419_v3 = vld [vmem:[#allocation2 + $0x64] sm:$0xf]  ;;  %v2434_v26 = vld [vmem:[#allocation5 + $0x58] sm:$0xff] }
  0x26   :  { %2513 = vmatpush.bf16.msra.mxu2 %v1914_v27  ;;  %2514 = vmatpush.bf16.msra.mxu3 %v1914_v27  ;;  %v1934_v63 = vor.u32 %v2407_v61, %v1931_v62  ;;  %v1979_v4 = vld [vmem:[#allocation2 + $0x68] sm:$0xf0]  ;;  %v2435_v25 = vld [vmem:[#allocation5 + $0x60] sm:$0xff] }
  0x29   :  { %273 = vmatpush.bf16.msra.mxu0 %v1910_v30  ;;  %2515 = vmatpush.bf16.msra.mxu1 %v1910_v30 }
  0x2a   :  { %2516 = vmatpush.bf16.msra.mxu2 %v1910_v30  ;;  %2517 = vmatpush.bf16.msra.mxu3 %v1910_v30 }
  0x2d   :  { %274 = vmatpush.bf16.msra.mxu0 %v1906_v33  ;;  %2518 = vmatpush.bf16.msra.mxu1 %v1906_v33 }
  0x2e   :  { %2519 = vmatpush.bf16.msra.mxu2 %v1906_v33  ;;  %2520 = vmatpush.bf16.msra.mxu3 %v1906_v33 }
  0x31   :  { %275 = vmatpush.bf16.msra.mxu0 %v1902_v36  ;;  %2521 = vmatpush.bf16.msra.mxu1 %v1902_v36 }
  0x32   :  { %2522 = vmatpush.bf16.msra.mxu2 %v1902_v36  ;;  %2523 = vmatpush.bf16.msra.mxu3 %v1902_v36 }
  0x35   :  { %276 = vmatpush.bf16.msra.mxu0 %v1898_v39  ;;  %2524 = vmatpush.bf16.msra.mxu1 %v1898_v39 }
  0x36   :  { %2525 = vmatpush.bf16.msra.mxu2 %v1898_v39  ;;  %2526 = vmatpush.bf16.msra.mxu3 %v1898_v39  ;;  %v2415_v39 = vld [vmem:[#allocation2 + $0x44] sm:$0xf] }
  0x38   :  { %277 = vmatmul.bf16.vlgmr.msra.gmra.mxu0 %v2796_v42  ;;  %287 = vmatmul.bf16.vlgmr.msra.gmra.mxu1 %v2798_v43 }
  0x39   :  { %545 = vmatpush.bf16.msrb.mxu1 %v2390_v41  ;;  %297 = vmatmul.bf16.vlgmr.msra.gmra.mxu2 %v2800_v44 }
  0x3a   :  { %594 = vmatpush.bf16.msrb.mxu2 %v2398_v40  ;;  %307 = vmatmul.bf16.vlgmr.msra.gmra.mxu3 %v2802_v45  ;;  %v1963_v40 = vld [vmem:[#allocation2 + $0x48] sm:$0xf0] }
  0x3d   :  { %546 = vmatpush.bf16.msrb.mxu1 %v2389_v47 }
  0x3e   :  { %595 = vmatpush.bf16.msrb.mxu2 %v2397_v46  ;;  %v1966_v46 = vor.u32 %v2415_v39, %v1963_v40 }
  0x41   :  { %547 = vmatpush.bf16.msrb.mxu1 %v2388_v49 }
  0x42   :  { %596 = vmatpush.bf16.msrb.mxu2 %v2396_v48 }
  0x45   :  { %548 = vmatpush.bf16.msrb.mxu1 %v2387_v57  ;;  %v2417_v57 = vld [vmem:[#allocation2 + $0x54] sm:$0xf] }
  0x46   :  { %597 = vmatpush.bf16.msrb.mxu2 %v2395_v50 }
  0x48   :  { %282 = vmatmul.bf16.gmra.mxu0 %v2826_v52  ;;  %292 = vmatmul.bf16.gmra.mxu1 %v2828_v53 }
  0x49   :  { %302 = vmatmul.bf16.gmra.mxu2 %v2830_v54  ;;  %549 = vmatpush.bf16.msrb.mxu1 %v2386_v59 }
  0x4a   :  { %598 = vmatpush.bf16.msrb.mxu2 %v2394_v51  ;;  %312 = vmatmul.bf16.gmra.mxu3 %v2832_v55 }
  0x4d   :  { %550 = vmatpush.bf16.msrb.mxu1 %v2385_v0 }
  0x4e   :  { %599 = vmatpush.bf16.msrb.mxu2 %v2393_v56 }
  0x51   :  { %551 = vmatpush.bf16.msrb.mxu1 %v2384_v1 }
  0x52   :  { %600 = vmatpush.bf16.msrb.mxu2 %v2392_v58  ;;  %v1971_v58 = vld [vmem:[#allocation2 + $0x58] sm:$0xf0] }
  0x55   :  { %552 = vmatpush.bf16.msrb.mxu1 %v2383_v2 }
  0x56   :  { %601 = vmatpush.bf16.msrb.mxu2 %v2391_v60  ;;  %v1974_v60 = vor.u32 %v2417_v57, %v1971_v58 }
  0x59   :  { %602 = vmatmul.bf16.vlgmr.msrb.gmra.mxu2 %v1934_v63 }
  0x69   :  { %607 = vmatmul.bf16.gmra.mxu2 %v1942_v5 }
  0x79   :  { %612 = vmatmul.bf16.gmra.mxu2 %v1950_v12  ;;  %v2421_v12 = vld [vmem:[#allocation2 + $0x74] sm:$0xf] }
  0x89   :  { %617 = vmatmul.bf16.gmra.mxu2 %v1958_v28 }
  0x99   :  { %622 = vmatmul.bf16.gmra.mxu2 %v1966_v46 }
  0xa9   :  { %627 = vmatmul.bf16.gmra.mxu2 %v1974_v60 }
  0xb5   :  { %v278_v6 = vpop.f32.mrf.mxu0  ;;  %v288_v7 = vpop.f32.mrf.mxu1 }
  0xb6   :  { %v318_v8 = vpack.c.bf16 %v278_v6, %v278_v6  ;;  %v322_v9 = vpack.c.bf16 %v288_v7, %v288_v7  ;;  %v1982_v6 = vor.u32 %v2419_v3, %v1979_v4 }
  0xb8   :  { %334 = vst [vmem:[#allocation2] sm:$0xf] %v318_v8 }
  0xb9   :  { %338 = vst [vmem:[#allocation2 + $0x20] sm:$0xf] %v322_v9  ;;  %632 = vmatmul.bf16.gmra.mxu2 %v1982_v6 }
  0xbc   :  { %v298_v24 = vpop.f32.mrf.mxu2 }
  0xbd   :  { %v280_v13 = vpop.f32.mrf.mxu0  ;;  %v290_v14 = vpop.f32.mrf.mxu1  ;;  %v326_v27 = vpack.c.bf16 %v298_v24, %v298_v24 }
  0xbe   :  { %v319_v15 = vpack.c.bf16 %v280_v13, %v280_v13  ;;  %v323_v16 = vpack.c.bf16 %v290_v14, %v290_v14  ;;  %v308_v56 = vpop.f32.mrf.mxu3  ;;  %v1987_v13 = vld [vmem:[#allocation2 + $0x78] sm:$0xf0] }
  0xbf   :  { %v1929_v21 = vld [vmem:[#allocation2] sm:$0xf]  ;;  %342 = vst [vmem:[#allocation2 + $0x40] sm:$0xf] %v326_v27  ;;  %v330_v59 = vpack.c.bf16 %v308_v56, %v308_v56  ;;  %v1990_v14 = vor.u32 %v2421_v12, %v1987_v13 }
  0xc0   :  { %335 = vst [vmem:[#allocation2 + $0x8] sm:$0xf] %v319_v15  ;;  %v1945_v49 = vld [vmem:[#allocation2 + $0x20] sm:$0xf] }
  0xc1   :  { %339 = vst [vmem:[#allocation2 + $0x28] sm:$0xf] %v323_v16 }
  0xc2   :  { %346 = vst [vmem:[#allocation2 + $0x60] sm:$0xf] %v330_v59 }
  0xc4   :  { %v300_v33 = vpop.f32.mrf.mxu2 }
  0xc5   :  { %v283_v17 = vpop.f32.mrf.mxu0  ;;  %v293_v18 = vpop.f32.mrf.mxu1  ;;  %v327_v34 = vpack.c.bf16 %v300_v33, %v300_v33  ;;  %v2431_v33 = vld [vmem:[#allocation5 + $0x40] sm:$0xff] }
  0xc6   :  { %v320_v19 = vpack.c.bf16 %v283_v17, %v283_v17  ;;  %v324_v20 = vpack.c.bf16 %v293_v18, %v293_v18  ;;  %v310_v61 = vpop.f32.mrf.mxu3  ;;  %v1961_v9 = vld [vmem:[#allocation2 + $0x40] sm:$0xf]  ;;  %v2438_v18 = vld [vmem:[#allocation5 + $0x78] sm:$0xff] }
  0xc7   :  { %v2408_v22 = vld [vmem:[#allocation2 + $0x4] sm:$0xf0]  ;;  %343 = vst [vmem:[#allocation2 + $0x48] sm:$0xf] %v327_v34  ;;  %v331_v62 = vpack.c.bf16 %v310_v61, %v310_v61  ;;  %1113 = vmatpush.bf16.msra.mxu1 %v2438_v18 }
  0xc8   :  { %336 = vst [vmem:[#allocation2 + $0x10] sm:$0xf] %v320_v19  ;;  %v1930_v23 = vor.u32 %v2408_v22, %v1929_v21  ;;  %v2412_v50 = vld [vmem:[#allocation2 + $0x24] sm:$0xf0]  ;;  %v2437_v21 = vld [vmem:[#allocation5 + $0x70] sm:$0xff] }
  0xc9   :  { %340 = vst [vmem:[#allocation2 + $0x30] sm:$0xf] %v324_v20  ;;  %v1946_v51 = vor.u32 %v2412_v50, %v1945_v49  ;;  %637 = vmatmul.bf16.gmra.mxu2 %v1990_v14  ;;  %v1977_v19 = vld [vmem:[#allocation2 + $0x60] sm:$0xf] }
  0xca   :  { %553 = vmatmul.bf16.vlgmr.msrb.gmra.mxu1 %v1930_v23  ;;  %347 = vst [vmem:[#allocation2 + $0x68] sm:$0xf] %v331_v62  ;;  %v2436_v23 = vld [vmem:[#allocation5 + $0x68] sm:$0xff] }
  0xcb   :  { %1114 = vmatpush.bf16.msra.mxu1 %v2437_v21 }
  0xcc   :  { %v303_v38 = vpop.f32.mrf.mxu2 }
  0xcd   :  { %v285_v29 = vpop.f32.mrf.mxu0  ;;  %v295_v30 = vpop.f32.mrf.mxu1  ;;  %v328_v41 = vpack.c.bf16 %v303_v38, %v303_v38 }
  0xce   :  { %v321_v31 = vpack.c.bf16 %v285_v29, %v285_v29  ;;  %v325_v32 = vpack.c.bf16 %v295_v30, %v295_v30  ;;  %v313_v2 = vpop.f32.mrf.mxu3  ;;  %v2416_v10 = vld [vmem:[#allocation2 + $0x44] sm:$0xf0]  ;;  %v2433_v30 = vld [vmem:[#allocation5 + $0x50] sm:$0xff] }
  0xcf   :  { %v1937_v35 = vld [vmem:[#allocation2 + $0x10] sm:$0xf]  ;;  %344 = vst [vmem:[#allocation2 + $0x50] sm:$0xf] %v328_v41  ;;  %v332_v5 = vpack.c.bf16 %v313_v2, %v313_v2  ;;  %v1962_v11 = vor.u32 %v2416_v10, %v1961_v9  ;;  %1115 = vmatpush.bf16.msra.mxu1 %v2436_v23 }
  0xd0   :  { %337 = vst [vmem:[#allocation2 + $0x18] sm:$0xf] %v321_v31  ;;  %v1953_v63 = vld [vmem:[#allocation2 + $0x30] sm:$0xf] }
  0xd1   :  { %341 = vst [vmem:[#allocation2 + $0x38] sm:$0xf] %v325_v32  ;;  %v2420_v20 = vld [vmem:[#allocation2 + $0x64] sm:$0xf0] }
  0xd2   :  { %348 = vst [vmem:[#allocation2 + $0x70] sm:$0xf] %v332_v5  ;;  %v1978_v22 = vor.u32 %v2420_v20, %v1977_v19  ;;  %v2432_v32 = vld [vmem:[#allocation5 + $0x48] sm:$0xff] }
  0xd3   :  { %1116 = vmatpush.bf16.msra.mxu1 %v2435_v25 }
  0xd4   :  { %v305_v47 = vpop.f32.mrf.mxu2 }
  0xd5   :  { %v329_v48 = vpack.c.bf16 %v305_v47, %v305_v47 }
  0xd6   :  { %v315_v7 = vpop.f32.mrf.mxu3  ;;  %v1969_v15 = vld [vmem:[#allocation2 + $0x50] sm:$0xf] }
  0xd7   :  { %v2410_v36 = vld [vmem:[#allocation2 + $0x14] sm:$0xf0]  ;;  %345 = vst [vmem:[#allocation2 + $0x58] sm:$0xf] %v329_v48  ;;  %v333_v8 = vpack.c.bf16 %v315_v7, %v315_v7  ;;  %1117 = vmatpush.bf16.msra.mxu1 %v2434_v26 }
  0xd8   :  { %v1938_v37 = vor.u32 %v2410_v36, %v1937_v35  ;;  %v2414_v0 = vld [vmem:[#allocation2 + $0x34] sm:$0xf0]  ;;  %v2865_v35 = vld [vmem:[%s3112_s3] ss:$0 sm:$0xff] }
  0xd9   :  { %v1954_v1 = vor.u32 %v2414_v0, %v1953_v63  ;;  %349 = vst [vmem:[#allocation2 + $0x78] sm:$0xf] %v333_v8  ;;  %v1985_v27 = vld [vmem:[#allocation2 + $0x70] sm:$0xf] }
  0xda   :  { %558 = vmatmul.bf16.gmra.mxu1 %v1938_v37 }
  0xdb   :  { %1118 = vmatpush.bf16.msra.mxu1 %v2433_v30 }
  0xdc   :  { %v603_v24 = vpop.f32.mrf.mxu2 }
  0xde   :  { %v2418_v16 = vld [vmem:[#allocation2 + $0x54] sm:$0xf0] }
  0xdf   :  { %v1970_v17 = vor.u32 %v2418_v16, %v1969_v15  ;;  %1119 = vmatpush.bf16.msra.mxu1 %v2432_v32 }
  0xe0   :  { %v2422_v28 = vld [vmem:[#allocation2 + $0x74] sm:$0xf0] }
  0xe1   :  { %v1986_v31 = vor.u32 %v2422_v28, %v1985_v27 }
  0xe3   :  { %1120 = vmatpush.bf16.msra.mxu1 %v2431_v33 }
  0xe4   :  { %v605_v29 = vpop.f32.mrf.mxu2 }
  0xea   :  { %563 = vmatmul.bf16.gmra.mxu1 %v1946_v51 }
  0xec   :  { %v608_v34 = vpop.f32.mrf.mxu2 }
  0xf4   :  { %v610_v38 = vpop.f32.mrf.mxu2 }
  0xfa   :  { %568 = vmatmul.bf16.gmra.mxu1 %v1954_v1 }
  0xfc   :  { %v613_v49 = vpop.f32.mrf.mxu2 }
 0x104   :  { %v615_v60 = vpop.f32.mrf.mxu2 }
 0x10a   :  { %573 = vmatmul.bf16.gmra.mxu1 %v1962_v11 }
 0x10c   :  { %v618_v7 = vpop.f32.mrf.mxu2 }
 0x11a   :  { %578 = vmatmul.bf16.gmra.mxu1 %v1970_v17  ;;  %v620_v17 = vpop.f32.mrf.mxu2 }
 0x12a   :  { %583 = vmatmul.bf16.gmra.mxu1 %v1978_v22 }
 0x13a   :  { %588 = vmatmul.bf16.gmra.mxu1 %v1986_v31 }
 0x147   :  { %v554_v36 = vpop.f32.mrf.mxu1 }
 0x148   :  { %v555_v37 = vadd.f32 %v2865_v35, %v554_v36 }
 0x14a   :  { %v604_v39 = vadd.f32 %v603_v24, %v555_v37  ;;  %v623_v24 = vpop.f32.mrf.mxu2 }
 0x14c   :  { %v643_v40 = vmax.f32 %v604_v39, 0.0 }
 0x14e   :  { %v659_v41 = vpack.c.bf16 %v643_v40, %v643_v40 }
 0x14f   :  { %v556_v46 = vpop.f32.mrf.mxu1 }
 0x150   :  { %675 = vst [vmem:[#allocation2 + $0x4] sm:$0xf] %v659_v41  ;;  %v557_v47 = vadd.f32 %v2865_v35, %v556_v46 }
 0x152   :  { %v606_v48 = vadd.f32 %v605_v29, %v557_v47 }
 0x154   :  { %v644_v50 = vmax.f32 %v606_v48, 0.0 }
 0x156   :  { %v660_v51 = vpack.c.bf16 %v644_v50, %v644_v50 }
 0x157   :  { %v559_v56 = vpop.f32.mrf.mxu1  ;;  %v2447_v63 = vld [vmem:[#allocation2 + $0x4] sm:$0xf] }
 0x158   :  { %676 = vst [vmem:[#allocation2 + $0xc] sm:$0xf] %v660_v51  ;;  %v560_v57 = vadd.f32 %v2865_v35, %v559_v56 }
 0x15a   :  { %v609_v58 = vadd.f32 %v608_v34, %v560_v57  ;;  %v625_v34 = vpop.f32.mrf.mxu2 }
 0x15c   :  { %v645_v59 = vmax.f32 %v609_v58, 0.0 }
 0x15e   :  { %v661_v61 = vpack.c.bf16 %v645_v59, %v645_v59 }
 0x15f   :  { %v561_v62 = vpop.f32.mrf.mxu1  ;;  %v2091_v0 = vld [vmem:[#allocation2 + $0x8] sm:$0xf0] }
 0x160   :  { %677 = vst [vmem:[#allocation2 + $0x14] sm:$0xf] %v661_v61  ;;  %v562_v1 = vadd.f32 %v2865_v35, %v561_v62  ;;  %v2094_v2 = vor.u32 %v2447_v63, %v2091_v0 }
 0x162   :  { %v611_v3 = vadd.f32 %v610_v38, %v562_v1  ;;  %1121 = vmatmul.bf16.vlgmr.msra.gmra.mxu1 %v2094_v2  ;;  %v628_v47 = vpop.f32.mrf.mxu2 }
 0x164   :  { %v646_v4 = vmax.f32 %v611_v3, 0.0 }
 0x166   :  { %v662_v5 = vpack.c.bf16 %v646_v4, %v646_v4 }
 0x167   :  { %v564_v6 = vpop.f32.mrf.mxu1  ;;  %v2449_v13 = vld [vmem:[#allocation2 + $0x14] sm:$0xf] }
 0x168   :  { %678 = vst [vmem:[#allocation2 + $0x1c] sm:$0xf] %v662_v5  ;;  %v565_v8 = vadd.f32 %v2865_v35, %v564_v6 }
 0x16a   :  { %v614_v9 = vadd.f32 %v613_v49, %v565_v8  ;;  %v630_v61 = vpop.f32.mrf.mxu2 }
 0x16c   :  { %v647_v10 = vmax.f32 %v614_v9, 0.0 }
 0x16e   :  { %v663_v11 = vpack.c.bf16 %v647_v10, %v647_v10 }
 0x16f   :  { %v566_v12 = vpop.f32.mrf.mxu1  ;;  %v2099_v14 = vld [vmem:[#allocation2 + $0x18] sm:$0xf0] }
 0x170   :  { %679 = vst [vmem:[#allocation2 + $0x24] sm:$0xf] %v663_v11  ;;  %v567_v15 = vadd.f32 %v2865_v35, %v566_v12  ;;  %v2102_v16 = vor.u32 %v2449_v13, %v2099_v14 }
 0x172   :  { %v616_v18 = vadd.f32 %v615_v60, %v567_v15  ;;  %1126 = vmatmul.bf16.gmra.mxu1 %v2102_v16 }
 0x174   :  { %v648_v19 = vmax.f32 %v616_v18, 0.0 }
 0x176   :  { %v664_v20 = vpack.c.bf16 %v648_v19, %v648_v19 }
 0x177   :  { %v569_v21 = vpop.f32.mrf.mxu1  ;;  %v2451_v28 = vld [vmem:[#allocation2 + $0x24] sm:$0xf] }
 0x178   :  { %680 = vst [vmem:[#allocation2 + $0x2c] sm:$0xf] %v664_v20  ;;  %v570_v22 = vadd.f32 %v2865_v35, %v569_v21 }
 0x17a   :  { %v619_v23 = vadd.f32 %v618_v7, %v570_v22  ;;  %v633_v7 = vpop.f32.mrf.mxu2 }
 0x17c   :  { %v649_v25 = vmax.f32 %v619_v23, 0.0 }
 0x17e   :  { %v665_v26 = vpack.c.bf16 %v649_v25, %v649_v25 }
 0x17f   :  { %v571_v27 = vpop.f32.mrf.mxu1  ;;  %v2107_v29 = vld [vmem:[#allocation2 + $0x28] sm:$0xf0] }
 0x180   :  { %681 = vst [vmem:[#allocation2 + $0x34] sm:$0xf] %v665_v26  ;;  %v572_v30 = vadd.f32 %v2865_v35, %v571_v27  ;;  %v2110_v31 = vor.u32 %v2451_v28, %v2107_v29 }
 0x182   :  { %v621_v32 = vadd.f32 %v620_v17, %v572_v30  ;;  %1131 = vmatmul.bf16.gmra.mxu1 %v2110_v31  ;;  %v635_v14 = vpop.f32.mrf.mxu2 }
 0x184   :  { %v650_v33 = vmax.f32 %v621_v32, 0.0 }
 0x186   :  { %v666_v36 = vpack.c.bf16 %v650_v33, %v650_v33 }
 0x187   :  { %v574_v37 = vpop.f32.mrf.mxu1  ;;  %v2453_v48 = vld [vmem:[#allocation2 + $0x34] sm:$0xf] }
 0x188   :  { %682 = vst [vmem:[#allocation2 + $0x3c] sm:$0xf] %v666_v36  ;;  %v575_v38 = vadd.f32 %v2865_v35, %v574_v37 }
 0x18a   :  { %v624_v39 = vadd.f32 %v623_v24, %v575_v38  ;;  %v638_v24 = vpop.f32.mrf.mxu2 }
 0x18c   :  { %v651_v40 = vmax.f32 %v624_v39, 0.0 }
 0x18e   :  { %v667_v41 = vpack.c.bf16 %v651_v40, %v651_v40 }
 0x18f   :  { %v576_v46 = vpop.f32.mrf.mxu1  ;;  %v2115_v49 = vld [vmem:[#allocation2 + $0x38] sm:$0xf0] }
 0x190   :  { %683 = vst [vmem:[#allocation2 + $0x44] sm:$0xf] %v667_v41  ;;  %v577_v50 = vadd.f32 %v2865_v35, %v576_v46  ;;  %v2118_v51 = vor.u32 %v2453_v48, %v2115_v49 }
 0x192   :  { %v626_v56 = vadd.f32 %v625_v34, %v577_v50  ;;  %1136 = vmatmul.bf16.gmra.mxu1 %v2118_v51  ;;  %v640_v36 = vpop.f32.mrf.mxu2 }
 0x194   :  { %v652_v57 = vmax.f32 %v626_v56, 0.0 }
 0x196   :  { %v668_v58 = vpack.c.bf16 %v652_v57, %v652_v57 }
 0x197   :  { %v579_v59 = vpop.f32.mrf.mxu1  ;;  %v2455_v2 = vld [vmem:[#allocation2 + $0x44] sm:$0xf] }
 0x198   :  { %684 = vst [vmem:[#allocation2 + $0x4c] sm:$0xf] %v668_v58  ;;  %v580_v60 = vadd.f32 %v2865_v35, %v579_v59 }
 0x19a   :  { %v629_v62 = vadd.f32 %v628_v47, %v580_v60  ;;  %v2073_v60 = vld [vmem:[#allocation2 + $0x44] sm:$0xf] }
 0x19c   :  { %v653_v63 = vmax.f32 %v629_v62, 0.0  ;;  %v2442_v62 = vld [vmem:[#allocation2 + $0x38] sm:$0xf0] }
 0x19e   :  { %v669_v0 = vpack.c.bf16 %v653_v63, %v653_v63  ;;  %v2069_v63 = vld [vmem:[#allocation2 + $0x34] sm:$0xf] }
 0x19f   :  { %v581_v1 = vpop.f32.mrf.mxu1  ;;  %v2123_v3 = vld [vmem:[#allocation2 + $0x48] sm:$0xf0] }
 0x1a0   :  { %685 = vst [vmem:[#allocation2 + $0x54] sm:$0xf] %v669_v0  ;;  %v582_v4 = vadd.f32 %v2865_v35, %v581_v1  ;;  %v2126_v5 = vor.u32 %v2455_v2, %v2123_v3  ;;  %v2443_v59 = vld [vmem:[#allocation2 + $0x48] sm:$0xf0]  ;;  %v2070_v0 = vor.u32 %v2442_v62, %v2069_v63  ;;  %v2065_v2 = vld [vmem:[#allocation2 + $0x24] sm:$0xf] }
 0x1a1   :  { %v2441_v1 = vld [vmem:[#allocation2 + $0x28] sm:$0xf0]  ;;  %v2478_v62 = vld [vmem:[#allocation7 + $0x78] sm:$0xff] }
 0x1a2   :  { %v631_v6 = vadd.f32 %v630_v61, %v582_v4  ;;  %1141 = vmatmul.bf16.gmra.mxu1 %v2126_v5  ;;  %v2074_v61 = vor.u32 %v2443_v59, %v2073_v60  ;;  %v2066_v3 = vor.u32 %v2441_v1, %v2065_v2  ;;  %v2440_v4 = vld [vmem:[#allocation2 + $0x18] sm:$0xf0]  ;;  %v2061_v5 = vld [vmem:[#allocation2 + $0x14] sm:$0xf] }
 0x1a3   :  { %v2477_v2 = vld [vmem:[#allocation7 + $0x70] sm:$0xff] }
 0x1a4   :  { %v654_v8 = vmax.f32 %v631_v6, 0.0  ;;  %v2062_v6 = vor.u32 %v2440_v4, %v2061_v5 }
 0x1a6   :  { %v670_v9 = vpack.c.bf16 %v654_v8, %v654_v8  ;;  %v2057_v8 = vld [vmem:[#allocation2 + $0x4] sm:$0xf] }
 0x1a7   :  { %v584_v10 = vpop.f32.mrf.mxu1  ;;  %v2457_v17 = vld [vmem:[#allocation2 + $0x54] sm:$0xf] }
 0x1a8   :  { %686 = vst [vmem:[#allocation2 + $0x5c] sm:$0xf] %v670_v9  ;;  %v585_v11 = vadd.f32 %v2865_v35, %v584_v10  ;;  %v2430_v10 = vld [vmem:[#allocation5 + $0x38] sm:$0xff] }
 0x1a9   :  { %1064 = vmatpush.bf16.msrb.mxu0 %v2430_v10  ;;  %v2475_v10 = vld [vmem:[#allocation7 + $0x60] sm:$0xff] }
 0x1aa   :  { %v634_v12 = vadd.f32 %v633_v7, %v585_v11  ;;  %v2439_v7 = vld [vmem:[#allocation2 + $0x8] sm:$0xf0]  ;;  %v2429_v11 = vld [vmem:[#allocation5 + $0x30] sm:$0xff] }
 0x1ab   :  { %v2058_v9 = vor.u32 %v2439_v7, %v2057_v8  ;;  %v2476_v7 = vld [vmem:[#allocation7 + $0x68] sm:$0xff] }
 0x1ac   :  { %v655_v13 = vmax.f32 %v634_v12, 0.0  ;;  %v2428_v12 = vld [vmem:[#allocation5 + $0x28] sm:$0xff] }
 0x1ad   :  { %1065 = vmatpush.bf16.msrb.mxu0 %v2429_v11 }
 0x1ae   :  { %v671_v15 = vpack.c.bf16 %v655_v13, %v655_v13  ;;  %v2427_v13 = vld [vmem:[#allocation5 + $0x20] sm:$0xff] }
 0x1af   :  { %v586_v16 = vpop.f32.mrf.mxu1  ;;  %v2131_v18 = vld [vmem:[#allocation2 + $0x58] sm:$0xf0] }
 0x1b0   :  { %687 = vst [vmem:[#allocation2 + $0x64] sm:$0xf] %v671_v15  ;;  %v587_v19 = vadd.f32 %v2865_v35, %v586_v16  ;;  %v2134_v20 = vor.u32 %v2457_v17, %v2131_v18  ;;  %v2444_v57 = vld [vmem:[#allocation2 + $0x58] sm:$0xf0] }
 0x1b1   :  { %1066 = vmatpush.bf16.msrb.mxu0 %v2428_v12  ;;  %v2474_v12 = vld [vmem:[#allocation7 + $0x58] sm:$0xff] }
 0x1b2   :  { %v636_v21 = vadd.f32 %v635_v14, %v587_v19  ;;  %1146 = vmatmul.bf16.gmra.mxu1 %v2134_v20 }
 0x1b4   :  { %v656_v22 = vmax.f32 %v636_v21, 0.0 }
 0x1b5   :  { %1067 = vmatpush.bf16.msrb.mxu0 %v2427_v13 }
 0x1b6   :  { %v672_v23 = vpack.c.bf16 %v656_v22, %v656_v22 }
 0x1b7   :  { %v589_v25 = vpop.f32.mrf.mxu1  ;;  %v2459_v31 = vld [vmem:[#allocation2 + $0x64] sm:$0xf] }
 0x1b8   :  { %688 = vst [vmem:[#allocation2 + $0x6c] sm:$0xf] %v672_v23  ;;  %v590_v26 = vadd.f32 %v2865_v35, %v589_v25  ;;  %v2081_v51 = vld [vmem:[#allocation2 + $0x64] sm:$0xf] }
 0x1ba   :  { %v639_v27 = vadd.f32 %v638_v24, %v590_v26 }
 0x1bc   :  { %v657_v28 = vmax.f32 %v639_v27, 0.0 }
 0x1be   :  { %v673_v29 = vpack.c.bf16 %v657_v28, %v657_v28 }
 0x1bf   :  { %v591_v30 = vpop.f32.mrf.mxu1  ;;  %v2139_v32 = vld [vmem:[#allocation2 + $0x68] sm:$0xf0] }
 0x1c0   :  { %689 = vst [vmem:[#allocation2 + $0x74] sm:$0xf] %v673_v29  ;;  %v592_v33 = vadd.f32 %v2865_v35, %v591_v30  ;;  %v2142_v34 = vor.u32 %v2459_v31, %v2139_v32  ;;  %v2445_v50 = vld [vmem:[#allocation2 + $0x68] sm:$0xf0]  ;;  %v2077_v35 = vld [vmem:[#allocation2 + $0x54] sm:$0xf] }
 0x1c1   :  { %v2082_v56 = vor.u32 %v2445_v50, %v2081_v51  ;;  %v2078_v58 = vor.u32 %v2444_v57, %v2077_v35 }
 0x1c2   :  { %v641_v37 = vadd.f32 %v640_v36, %v592_v33  ;;  %1151 = vmatmul.bf16.gmra.mxu1 %v2142_v34 }
 0x1c4   :  { %v658_v38 = vmax.f32 %v641_v37, 0.0 }
 0x1c6   :  { %v674_v39 = vpack.c.bf16 %v658_v38, %v658_v38 }
 0x1c7   :  { %v2085_v40 = vld [vmem:[#allocation2 + $0x74] sm:$0xf] }
 0x1c8   :  { %690 = vst [vmem:[#allocation2 + $0x7c] sm:$0xf] %v674_v39  ;;  %v2461_v46 = vld [vmem:[#allocation2 + $0x74] sm:$0xf] }
 0x1cf   :  { %v2446_v41 = vld [vmem:[#allocation2 + $0x78] sm:$0xf0] }
 0x1d0   :  { %v2147_v47 = vld [vmem:[#allocation2 + $0x78] sm:$0xf0]  ;;  %v2086_v48 = vor.u32 %v2446_v41, %v2085_v40 }
 0x1d1   :  { %v2150_v49 = vor.u32 %v2461_v46, %v2147_v47 }
 0x1d2   :  { %788 = vmatpush.bf16.msrb.mxu3 %v2086_v48 }
 0x1d3   :  { %1156 = vmatmul.bf16.gmra.mxu1 %v2150_v49 }
 0x1d6   :  { %789 = vmatpush.bf16.msrb.mxu3 %v2082_v56 }
 0x1da   :  { %790 = vmatpush.bf16.msrb.mxu3 %v2078_v58 }
 0x1de   :  { %791 = vmatpush.bf16.msrb.mxu3 %v2074_v61 }
 0x1df   :  { %v1122_v8 = vpop.f32.mrf.mxu1 }
 0x1e2   :  { %792 = vmatpush.bf16.msrb.mxu3 %v2070_v0 }
 0x1e6   :  { %793 = vmatpush.bf16.msrb.mxu3 %v2066_v3 }
 0x1e7   :  { %v1124_v13 = vpop.f32.mrf.mxu1 }
 0x1ea   :  { %794 = vmatpush.bf16.msrb.mxu3 %v2062_v6 }
 0x1ee   :  { %795 = vmatpush.bf16.msrb.mxu3 %v2058_v9 }
 0x1f1   :  { %796 = vmatmul.bf16.vlgmr.msrb.gmra.mxu3 %v2796_v42  ;;  %v2426_v42 = vld [vmem:[#allocation5 + $0x18] sm:$0xff] }
 0x1f2   :  { %1068 = vmatpush.bf16.msrb.mxu0 %v2426_v42  ;;  %v2473_v42 = vld [vmem:[#allocation7 + $0x50] sm:$0xff] }
 0x201   :  { %801 = vmatmul.bf16.gmra.mxu3 %v2826_v52  ;;  %v2425_v52 = vld [vmem:[#allocation5 + $0x10] sm:$0xff] }
 0x202   :  { %1069 = vmatpush.bf16.msrb.mxu0 %v2425_v52 }
 0x211   :  { %806 = vmatmul.bf16.gmra.mxu3 %v2798_v43  ;;  %v2424_v43 = vld [vmem:[#allocation5 + $0x8] sm:$0xff] }
 0x212   :  { %1070 = vmatpush.bf16.msrb.mxu0 %v2424_v43 }
 0x221   :  { %811 = vmatmul.bf16.gmra.mxu3 %v2828_v53 }
 0x231   :  { %816 = vmatmul.bf16.gmra.mxu3 %v2800_v44  ;;  %v2423_v44 = vld [vmem:[#allocation5] sm:$0xff] }
 0x232   :  { %1071 = vmatpush.bf16.msrb.mxu0 %v2423_v44 }
 0x236   :  { %1632 = vmatpush.bf16.msra.mxu0 %v2478_v62 }
 0x23a   :  { %1633 = vmatpush.bf16.msra.mxu0 %v2477_v2 }
 0x23e   :  { %1634 = vmatpush.bf16.msra.mxu0 %v2476_v7 }
 0x241   :  { %821 = vmatmul.bf16.gmra.mxu3 %v2830_v54 }
 0x242   :  { %1635 = vmatpush.bf16.msra.mxu0 %v2475_v10 }
 0x246   :  { %1636 = vmatpush.bf16.msra.mxu0 %v2474_v12 }
 0x24a   :  { %1637 = vmatpush.bf16.msra.mxu0 %v2473_v42 }
 0x251   :  { %826 = vmatmul.bf16.gmra.mxu3 %v2802_v45 }
 0x261   :  { %831 = vmatmul.bf16.gmra.mxu3 %v2832_v55 }
 0x274   :  { %v797_v53 = vpop.f32.mrf.mxu3 }
 0x275   :  { %v837_v54 = vpack.c.bf16 %v797_v53, %v797_v53  ;;  %v2472_v53 = vld [vmem:[#allocation7 + $0x48] sm:$0xff] }
 0x276   :  { %1638 = vmatpush.bf16.msra.mxu0 %v2472_v53 }
 0x277   :  { %853 = vst [vmem:[#allocation2] sm:$0xf] %v837_v54  ;;  %v2471_v54 = vld [vmem:[#allocation7 + $0x40] sm:$0xff] }
 0x27a   :  { %1639 = vmatpush.bf16.msra.mxu0 %v2471_v54 }
 0x27c   :  { %v799_v14 = vpop.f32.mrf.mxu3 }
 0x27d   :  { %v838_v15 = vpack.c.bf16 %v799_v14, %v799_v14  ;;  %v1127_v14 = vpop.f32.mrf.mxu1 }
 0x27e   :  { %v2089_v17 = vld [vmem:[#allocation2] sm:$0xf] }
 0x27f   :  { %854 = vst [vmem:[#allocation2 + $0x8] sm:$0xf] %v838_v15  ;;  %v2894_v15 = vld [vmem:[%s3114_s5] ss:$0 sm:$0xff] }
 0x284   :  { %v802_v16 = vpop.f32.mrf.mxu3 }
 0x285   :  { %v839_v45 = vpack.c.bf16 %v802_v16, %v802_v16 }
 0x286   :  { %v2448_v18 = vld [vmem:[#allocation2 + $0x4] sm:$0xf0] }
 0x287   :  { %855 = vst [vmem:[#allocation2 + $0x10] sm:$0xf] %v839_v45  ;;  %v2090_v19 = vor.u32 %v2448_v18, %v2089_v17  ;;  %v1129_v17 = vpop.f32.mrf.mxu1 }
 0x289   :  { %1072 = vmatmul.bf16.vlgmr.msrb.gmra.mxu0 %v2090_v19 }
 0x28c   :  { %v804_v20 = vpop.f32.mrf.mxu3 }
 0x28d   :  { %v840_v21 = vpack.c.bf16 %v804_v20, %v804_v20 }
 0x28e   :  { %v2097_v23 = vld [vmem:[#allocation2 + $0x10] sm:$0xf] }
 0x28f   :  { %856 = vst [vmem:[#allocation2 + $0x18] sm:$0xf] %v840_v21 }
 0x294   :  { %v807_v55 = vpop.f32.mrf.mxu3 }
 0x295   :  { %v841_v22 = vpack.c.bf16 %v807_v55, %v807_v55 }
 0x296   :  { %v2450_v24 = vld [vmem:[#allocation2 + $0x14] sm:$0xf0] }
 0x297   :  { %857 = vst [vmem:[#allocation2 + $0x20] sm:$0xf] %v841_v22  ;;  %v2098_v25 = vor.u32 %v2450_v24, %v2097_v23  ;;  %v1132_v23 = vpop.f32.mrf.mxu1 }
 0x299   :  { %1077 = vmatmul.bf16.gmra.mxu0 %v2098_v25 }
 0x29c   :  { %v809_v26 = vpop.f32.mrf.mxu3 }
 0x29d   :  { %v842_v27 = vpack.c.bf16 %v809_v26, %v809_v26 }
 0x29e   :  { %v2105_v30 = vld [vmem:[#allocation2 + $0x20] sm:$0xf] }
 0x29f   :  { %858 = vst [vmem:[#allocation2 + $0x28] sm:$0xf] %v842_v27 }
 0x2a4   :  { %v812_v28 = vpop.f32.mrf.mxu3 }
 0x2a5   :  { %v843_v29 = vpack.c.bf16 %v812_v28, %v812_v28 }
 0x2a6   :  { %v2452_v31 = vld [vmem:[#allocation2 + $0x24] sm:$0xf0] }
 0x2a7   :  { %859 = vst [vmem:[#allocation2 + $0x30] sm:$0xf] %v843_v29  ;;  %v2106_v32 = vor.u32 %v2452_v31, %v2105_v30  ;;  %v1134_v30 = vpop.f32.mrf.mxu1 }
 0x2a9   :  { %1082 = vmatmul.bf16.gmra.mxu0 %v2106_v32 }
 0x2ac   :  { %v814_v33 = vpop.f32.mrf.mxu3 }
 0x2ad   :  { %v844_v34 = vpack.c.bf16 %v814_v33, %v814_v33 }
 0x2ae   :  { %v2113_v38 = vld [vmem:[#allocation2 + $0x30] sm:$0xf] }
 0x2af   :  { %860 = vst [vmem:[#allocation2 + $0x38] sm:$0xf] %v844_v34 }
 0x2b4   :  { %v817_v36 = vpop.f32.mrf.mxu3 }
 0x2b5   :  { %v845_v37 = vpack.c.bf16 %v817_v36, %v817_v36 }
 0x2b6   :  { %v2454_v39 = vld [vmem:[#allocation2 + $0x34] sm:$0xf0] }
 0x2b7   :  { %861 = vst [vmem:[#allocation2 + $0x40] sm:$0xf] %v845_v37  ;;  %v2114_v40 = vor.u32 %v2454_v39, %v2113_v38 }
 0x2b9   :  { %1087 = vmatmul.bf16.gmra.mxu0 %v2114_v40 }
 0x2bc   :  { %v819_v41 = vpop.f32.mrf.mxu3 }
 0x2bd   :  { %v846_v46 = vpack.c.bf16 %v819_v41, %v819_v41  ;;  %v1137_v41 = vpop.f32.mrf.mxu1 }
 0x2be   :  { %v2121_v49 = vld [vmem:[#allocation2 + $0x40] sm:$0xf] }
 0x2bf   :  { %862 = vst [vmem:[#allocation2 + $0x48] sm:$0xf] %v846_v46 }
 0x2c4   :  { %v822_v47 = vpop.f32.mrf.mxu3 }
 0x2c5   :  { %v847_v48 = vpack.c.bf16 %v822_v47, %v822_v47 }
 0x2c6   :  { %v2456_v50 = vld [vmem:[#allocation2 + $0x44] sm:$0xf0] }
 0x2c7   :  { %863 = vst [vmem:[#allocation2 + $0x50] sm:$0xf] %v847_v48  ;;  %v2122_v51 = vor.u32 %v2456_v50, %v2121_v49 }
 0x2c9   :  { %1092 = vmatmul.bf16.gmra.mxu0 %v2122_v51 }
 0x2cc   :  { %v824_v56 = vpop.f32.mrf.mxu3 }
 0x2cd   :  { %v848_v57 = vpack.c.bf16 %v824_v56, %v824_v56 }
 0x2ce   :  { %v2129_v59 = vld [vmem:[#allocation2 + $0x50] sm:$0xf] }
 0x2cf   :  { %864 = vst [vmem:[#allocation2 + $0x58] sm:$0xf] %v848_v57 }
 0x2d4   :  { %v827_v35 = vpop.f32.mrf.mxu3 }
 0x2d5   :  { %v849_v58 = vpack.c.bf16 %v827_v35, %v827_v35 }
 0x2d6   :  { %v2458_v60 = vld [vmem:[#allocation2 + $0x54] sm:$0xf0] }
 0x2d7   :  { %865 = vst [vmem:[#allocation2 + $0x60] sm:$0xf] %v849_v58  ;;  %v2130_v61 = vor.u32 %v2458_v60, %v2129_v59  ;;  %v1139_v59 = vpop.f32.mrf.mxu1 }
 0x2d9   :  { %1097 = vmatmul.bf16.gmra.mxu0 %v2130_v61 }
 0x2dc   :  { %v829_v63 = vpop.f32.mrf.mxu3 }
 0x2dd   :  { %v850_v0 = vpack.c.bf16 %v829_v63, %v829_v63 }
 0x2de   :  { %v2137_v4 = vld [vmem:[#allocation2 + $0x60] sm:$0xf] }
 0x2df   :  { %866 = vst [vmem:[#allocation2 + $0x68] sm:$0xf] %v850_v0  ;;  %v1142_v2 = vpop.f32.mrf.mxu1 }
 0x2e4   :  { %v832_v1 = vpop.f32.mrf.mxu3 }
 0x2e5   :  { %v851_v3 = vpack.c.bf16 %v832_v1, %v832_v1 }
 0x2e6   :  { %v2460_v5 = vld [vmem:[#allocation2 + $0x64] sm:$0xf0] }
 0x2e7   :  { %867 = vst [vmem:[#allocation2 + $0x70] sm:$0xf] %v851_v3  ;;  %v2138_v6 = vor.u32 %v2460_v5, %v2137_v4  ;;  %v1144_v12 = vpop.f32.mrf.mxu1 }
 0x2e9   :  { %1102 = vmatmul.bf16.gmra.mxu0 %v2138_v6 }
 0x2ec   :  { %v834_v9 = vpop.f32.mrf.mxu3 }
 0x2ed   :  { %v852_v11 = vpack.c.bf16 %v834_v9, %v834_v9 }
 0x2ee   :  { %v2145_v52 = vld [vmem:[#allocation2 + $0x70] sm:$0xf] }
 0x2ef   :  { %868 = vst [vmem:[#allocation2 + $0x78] sm:$0xf] %v852_v11  ;;  %v1147_v54 = vpop.f32.mrf.mxu1 }
 0x2f6   :  { %v2462_v43 = vld [vmem:[#allocation2 + $0x74] sm:$0xf0] }
 0x2f7   :  { %v2146_v44 = vor.u32 %v2462_v43, %v2145_v52 }
 0x2f9   :  { %1107 = vmatmul.bf16.gmra.mxu0 %v2146_v44 }
 0x306   :  { %v1073_v16 = vpop.f32.mrf.mxu0 }
 0x307   :  { %v1074_v45 = vadd.f32 %v2894_v15, %v1073_v16 }
 0x309   :  { %v1123_v18 = vadd.f32 %v1122_v8, %v1074_v45 }
 0x30b   :  { %v1162_v19 = vmax.f32 %v1123_v18, 0.0 }
 0x30d   :  { %v1178_v20 = vpack.c.bf16 %v1162_v19, %v1162_v19 }
 0x30e   :  { %v1075_v21 = vpop.f32.mrf.mxu0 }
 0x30f   :  { %1194 = vst [vmem:[#allocation2 + $0x4] sm:$0xf] %v1178_v20  ;;  %v1076_v55 = vadd.f32 %v2894_v15, %v1075_v21 }
 0x311   :  { %v1125_v22 = vadd.f32 %v1124_v13, %v1076_v55 }
 0x313   :  { %v1163_v24 = vmax.f32 %v1125_v22, 0.0 }
 0x315   :  { %v1179_v25 = vpack.c.bf16 %v1163_v24, %v1163_v24 }
 0x316   :  { %v1078_v26 = vpop.f32.mrf.mxu0  ;;  %v2487_v33 = vld [vmem:[#allocation2 + $0x4] sm:$0xf] }
 0x317   :  { %1195 = vst [vmem:[#allocation2 + $0xc] sm:$0xf] %v1179_v25  ;;  %v1079_v27 = vadd.f32 %v2894_v15, %v1078_v26 }
 0x319   :  { %v1128_v28 = vadd.f32 %v1127_v14, %v1079_v27 }
 0x31b   :  { %v1164_v29 = vmax.f32 %v1128_v28, 0.0 }
 0x31d   :  { %v1180_v31 = vpack.c.bf16 %v1164_v29, %v1164_v29 }
 0x31e   :  { %v1080_v32 = vpop.f32.mrf.mxu0  ;;  %v2251_v34 = vld [vmem:[#allocation2 + $0x8] sm:$0xf0] }
 0x31f   :  { %1196 = vst [vmem:[#allocation2 + $0x14] sm:$0xf] %v1180_v31  ;;  %v1081_v36 = vadd.f32 %v2894_v15, %v1080_v32  ;;  %v2254_v37 = vor.u32 %v2487_v33, %v2251_v34 }
 0x321   :  { %v1130_v38 = vadd.f32 %v1129_v17, %v1081_v36  ;;  %1640 = vmatmul.bf16.vlgmr.msra.gmra.mxu0 %v2254_v37 }
 0x323   :  { %v1165_v39 = vmax.f32 %v1130_v38, 0.0 }
 0x325   :  { %v1181_v40 = vpack.c.bf16 %v1165_v39, %v1165_v39 }
 0x326   :  { %v1083_v46 = vpop.f32.mrf.mxu0  ;;  %v2489_v56 = vld [vmem:[#allocation2 + $0x14] sm:$0xf] }
 0x327   :  { %1197 = vst [vmem:[#allocation2 + $0x1c] sm:$0xf] %v1181_v40  ;;  %v1084_v47 = vadd.f32 %v2894_v15, %v1083_v46 }
 0x329   :  { %v1133_v48 = vadd.f32 %v1132_v23, %v1084_v47  ;;  %v1149_v23 = vpop.f32.mrf.mxu1 }
 0x32b   :  { %v1166_v49 = vmax.f32 %v1133_v48, 0.0 }
 0x32d   :  { %v1182_v50 = vpack.c.bf16 %v1166_v49, %v1166_v49 }
 0x32e   :  { %v1085_v51 = vpop.f32.mrf.mxu0  ;;  %v2259_v57 = vld [vmem:[#allocation2 + $0x18] sm:$0xf0] }
 0x32f   :  { %1198 = vst [vmem:[#allocation2 + $0x24] sm:$0xf] %v1182_v50  ;;  %v1086_v35 = vadd.f32 %v2894_v15, %v1085_v51  ;;  %v2262_v58 = vor.u32 %v2489_v56, %v2259_v57 }
 0x331   :  { %v1135_v60 = vadd.f32 %v1134_v30, %v1086_v35  ;;  %1645 = vmatmul.bf16.gmra.mxu0 %v2262_v58  ;;  %v1152_v33 = vpop.f32.mrf.mxu1 }
 0x333   :  { %v1167_v61 = vmax.f32 %v1135_v60, 0.0 }
 0x335   :  { %v1183_v62 = vpack.c.bf16 %v1167_v61, %v1167_v61 }
 0x336   :  { %v1088_v63 = vpop.f32.mrf.mxu0  ;;  %v2491_v6 = vld [vmem:[#allocation2 + $0x24] sm:$0xf] }
 0x337   :  { %1199 = vst [vmem:[#allocation2 + $0x2c] sm:$0xf] %v1183_v62  ;;  %v1089_v0 = vadd.f32 %v2894_v15, %v1088_v63 }
 0x339   :  { %v1138_v1 = vadd.f32 %v1137_v41, %v1089_v0  ;;  %v1154_v41 = vpop.f32.mrf.mxu1 }
 0x33b   :  { %v1168_v3 = vmax.f32 %v1138_v1, 0.0 }
 0x33d   :  { %v1184_v4 = vpack.c.bf16 %v1168_v3, %v1168_v3 }
 0x33e   :  { %v1090_v5 = vpop.f32.mrf.mxu0  ;;  %v2267_v7 = vld [vmem:[#allocation2 + $0x28] sm:$0xf0] }
 0x33f   :  { %1200 = vst [vmem:[#allocation2 + $0x34] sm:$0xf] %v1184_v4  ;;  %v1091_v8 = vadd.f32 %v2894_v15, %v1090_v5  ;;  %v2270_v9 = vor.u32 %v2491_v6, %v2267_v7 }
 0x341   :  { %v1140_v10 = vadd.f32 %v1139_v59, %v1091_v8  ;;  %1650 = vmatmul.bf16.gmra.mxu0 %v2270_v9  ;;  %v1157_v58 = vpop.f32.mrf.mxu1 }
 0x343   :  { %v1169_v11 = vmax.f32 %v1140_v10, 0.0 }
 0x345   :  { %v1185_v13 = vpack.c.bf16 %v1169_v11, %v1169_v11 }
 0x346   :  { %v1093_v42 = vpop.f32.mrf.mxu0  ;;  %v2493_v16 = vld [vmem:[#allocation2 + $0x34] sm:$0xf] }
 0x347   :  { %1201 = vst [vmem:[#allocation2 + $0x3c] sm:$0xf] %v1185_v13  ;;  %v1094_v52 = vadd.f32 %v2894_v15, %v1093_v42 }
 0x349   :  { %v1143_v43 = vadd.f32 %v1142_v2, %v1094_v52  ;;  %v1159_v5 = vpop.f32.mrf.mxu1 }
 0x34b   :  { %v1170_v44 = vmax.f32 %v1143_v43, 0.0 }
 0x34d   :  { %v1186_v53 = vpack.c.bf16 %v1170_v44, %v1170_v44 }
 0x34e   :  { %v1095_v14 = vpop.f32.mrf.mxu0  ;;  %v2275_v45 = vld [vmem:[#allocation2 + $0x38] sm:$0xf0] }
 0x34f   :  { %1202 = vst [vmem:[#allocation2 + $0x44] sm:$0xf] %v1186_v53  ;;  %v1096_v17 = vadd.f32 %v2894_v15, %v1095_v14  ;;  %v2278_v18 = vor.u32 %v2493_v16, %v2275_v45 }
 0x351   :  { %v1145_v19 = vadd.f32 %v1144_v12, %v1096_v17  ;;  %1655 = vmatmul.bf16.gmra.mxu0 %v2278_v18  ;;  %v2482_v17 = vld [vmem:[#allocation2 + $0x38] sm:$0xf0]  ;;  %v2229_v18 = vld [vmem:[#allocation2 + $0x34] sm:$0xf] }
 0x353   :  { %v1171_v20 = vmax.f32 %v1145_v19, 0.0  ;;  %v2230_v19 = vor.u32 %v2482_v17, %v2229_v18 }
 0x355   :  { %v1187_v21 = vpack.c.bf16 %v1171_v20, %v1171_v20  ;;  %v2481_v20 = vld [vmem:[#allocation2 + $0x28] sm:$0xf0] }
 0x356   :  { %v1098_v55 = vpop.f32.mrf.mxu0  ;;  %v2495_v28 = vld [vmem:[#allocation2 + $0x44] sm:$0xf] }
 0x357   :  { %1203 = vst [vmem:[#allocation2 + $0x4c] sm:$0xf] %v1187_v21  ;;  %v1099_v22 = vadd.f32 %v2894_v15, %v1098_v55  ;;  %v2233_v16 = vld [vmem:[#allocation2 + $0x44] sm:$0xf] }
 0x358   :  { %v2225_v21 = vld [vmem:[#allocation2 + $0x24] sm:$0xf] }
 0x359   :  { %v1148_v24 = vadd.f32 %v1147_v54, %v1099_v22  ;;  %v2226_v55 = vor.u32 %v2481_v20, %v2225_v21  ;;  %v2480_v22 = vld [vmem:[#allocation2 + $0x18] sm:$0xf0] }
 0x35b   :  { %v1172_v25 = vmax.f32 %v1148_v24, 0.0 }
 0x35d   :  { %v1188_v26 = vpack.c.bf16 %v1172_v25, %v1172_v25  ;;  %v2479_v25 = vld [vmem:[#allocation2 + $0x8] sm:$0xf0] }
 0x35e   :  { %v1100_v27 = vpop.f32.mrf.mxu0  ;;  %v2283_v29 = vld [vmem:[#allocation2 + $0x48] sm:$0xf0] }
 0x35f   :  { %1204 = vst [vmem:[#allocation2 + $0x54] sm:$0xf] %v1188_v26  ;;  %v1101_v30 = vadd.f32 %v2894_v15, %v1100_v27  ;;  %v2286_v31 = vor.u32 %v2495_v28, %v2283_v29  ;;  %v2483_v14 = vld [vmem:[#allocation2 + $0x48] sm:$0xf0]  ;;  %v2217_v26 = vld [vmem:[#allocation2 + $0x4] sm:$0xf] }
 0x360   :  { %v2234_v45 = vor.u32 %v2483_v14, %v2233_v16  ;;  %v2218_v27 = vor.u32 %v2479_v25, %v2217_v26  ;;  %v2599_v28 = vld [vmem:[#allocation3] sm:$0xff]  ;;  %v2600_v29 = vld [vmem:[#allocation3 + $0x8] sm:$0xff] }
 0x361   :  { %v1150_v32 = vadd.f32 %v1149_v23, %v1101_v30  ;;  %1660 = vmatmul.bf16.gmra.mxu0 %v2286_v31  ;;  %v2221_v23 = vld [vmem:[#allocation2 + $0x14] sm:$0xf]  ;;  %v2602_v31 = vld [vmem:[#allocation3 + $0x18] sm:$0xff] }
 0x362   :  { %v2222_v24 = vor.u32 %v2480_v22, %v2221_v23  ;;  %v2601_v30 = vld [vmem:[#allocation3 + $0x10] sm:$0xff] }
 0x363   :  { %v1173_v34 = vmax.f32 %v1150_v32, 0.0  ;;  %v2603_v32 = vld [vmem:[#allocation3 + $0x20] sm:$0xff] }
 0x365   :  { %v1189_v36 = vpack.c.bf16 %v1173_v34, %v1173_v34  ;;  %v2470_v34 = vld [vmem:[#allocation7 + $0x38] sm:$0xff] }
 0x366   :  { %v1103_v37 = vpop.f32.mrf.mxu0  ;;  %v2497_v48 = vld [vmem:[#allocation2 + $0x54] sm:$0xf]  ;;  %1583 = vmatpush.bf16.msra.mxu3 %v2470_v34 }
 0x367   :  { %1205 = vst [vmem:[#allocation2 + $0x5c] sm:$0xf] %v1189_v36  ;;  %v1104_v38 = vadd.f32 %v2894_v15, %v1103_v37  ;;  %v2469_v36 = vld [vmem:[#allocation7 + $0x30] sm:$0xff]  ;;  %v2468_v37 = vld [vmem:[#allocation7 + $0x28] sm:$0xff] }
 0x369   :  { %v1153_v39 = vadd.f32 %v1152_v33, %v1104_v38  ;;  %v2604_v33 = vld [vmem:[#allocation3 + $0x28] sm:$0xff]  ;;  %v2605_v38 = vld [vmem:[#allocation3 + $0x30] sm:$0xff] }
 0x36a   :  { %1584 = vmatpush.bf16.msra.mxu3 %v2469_v36 }
 0x36b   :  { %v1174_v40 = vmax.f32 %v1153_v39, 0.0  ;;  %v2467_v39 = vld [vmem:[#allocation7 + $0x20] sm:$0xff] }
 0x36d   :  { %v1190_v46 = vpack.c.bf16 %v1174_v40, %v1174_v40  ;;  %v2466_v40 = vld [vmem:[#allocation7 + $0x18] sm:$0xff] }
 0x36e   :  { %v1105_v47 = vpop.f32.mrf.mxu0  ;;  %v2291_v49 = vld [vmem:[#allocation2 + $0x58] sm:$0xf0]  ;;  %1585 = vmatpush.bf16.msra.mxu3 %v2468_v37 }
 0x36f   :  { %1206 = vst [vmem:[#allocation2 + $0x64] sm:$0xf] %v1190_v46  ;;  %v1106_v50 = vadd.f32 %v2894_v15, %v1105_v47  ;;  %v2294_v51 = vor.u32 %v2497_v48, %v2291_v49  ;;  %v2484_v53 = vld [vmem:[#allocation2 + $0x58] sm:$0xf0]  ;;  %v2464_v46 = vld [vmem:[#allocation7 + $0x8] sm:$0xff]  ;;  %v2463_v48 = vld [vmem:[#allocation7] sm:$0xff] }
 0x370   :  { %v2606_v47 = vld [vmem:[#allocation3 + $0x38] sm:$0xff] }
 0x371   :  { %v1155_v56 = vadd.f32 %v1154_v41, %v1106_v50  ;;  %1665 = vmatmul.bf16.gmra.mxu0 %v2294_v51  ;;  %v2465_v41 = vld [vmem:[#allocation7 + $0x10] sm:$0xff] }
 0x372   :  { %1586 = vmatpush.bf16.msra.mxu3 %v2467_v39 }
 0x373   :  { %v1175_v57 = vmax.f32 %v1155_v56, 0.0 }
 0x375   :  { %v1191_v35 = vpack.c.bf16 %v1175_v57, %v1175_v57 }
 0x376   :  { %v1108_v59 = vpop.f32.mrf.mxu0  ;;  %v2499_v1 = vld [vmem:[#allocation2 + $0x64] sm:$0xf]  ;;  %1587 = vmatpush.bf16.msra.mxu3 %v2466_v40  ;;  %v2915_v40 = vld [vmem:[%s3116_s7] ss:$0 sm:$0xff] }
 0x377   :  { %1207 = vst [vmem:[#allocation2 + $0x6c] sm:$0xf] %v1191_v35  ;;  %v1109_v60 = vadd.f32 %v2894_v15, %v1108_v59  ;;  %v2241_v43 = vld [vmem:[#allocation2 + $0x64] sm:$0xf] }
 0x379   :  { %v1158_v61 = vadd.f32 %v1157_v58, %v1109_v60 }
 0x37a   :  { %1588 = vmatpush.bf16.msra.mxu3 %v2465_v41 }
 0x37b   :  { %v1176_v62 = vmax.f32 %v1158_v61, 0.0 }
 0x37d   :  { %v1192_v63 = vpack.c.bf16 %v1176_v62, %v1176_v62 }
 0x37e   :  { %v1110_v0 = vpop.f32.mrf.mxu0  ;;  %v2299_v2 = vld [vmem:[#allocation2 + $0x68] sm:$0xf0]  ;;  %1589 = vmatpush.bf16.msra.mxu3 %v2464_v46 }
 0x37f   :  { %1208 = vst [vmem:[#allocation2 + $0x74] sm:$0xf] %v1192_v63  ;;  %v1111_v3 = vadd.f32 %v2894_v15, %v1110_v0  ;;  %v2302_v4 = vor.u32 %v2499_v1, %v2299_v2  ;;  %v2485_v52 = vld [vmem:[#allocation2 + $0x68] sm:$0xf0]  ;;  %v2237_v15 = vld [vmem:[#allocation2 + $0x54] sm:$0xf] }
 0x380   :  { %v2242_v44 = vor.u32 %v2485_v52, %v2241_v43  ;;  %v2238_v54 = vor.u32 %v2484_v53, %v2237_v15 }
 0x381   :  { %v1160_v6 = vadd.f32 %v1159_v5, %v1111_v3  ;;  %1670 = vmatmul.bf16.gmra.mxu0 %v2302_v4 }
 0x382   :  { %1590 = vmatpush.bf16.msra.mxu3 %v2463_v48 }
 0x383   :  { %v1177_v7 = vmax.f32 %v1160_v6, 0.0 }
 0x385   :  { %v1193_v8 = vpack.c.bf16 %v1177_v7, %v1177_v7 }
 0x386   :  { %v2245_v9 = vld [vmem:[#allocation2 + $0x74] sm:$0xf] }
 0x387   :  { %1209 = vst [vmem:[#allocation2 + $0x7c] sm:$0xf] %v1193_v8  ;;  %v2501_v11 = vld [vmem:[#allocation2 + $0x74] sm:$0xf] }
 0x38e   :  { %v2486_v10 = vld [vmem:[#allocation2 + $0x78] sm:$0xf0] }
 0x38f   :  { %v2307_v12 = vld [vmem:[#allocation2 + $0x78] sm:$0xf0]  ;;  %v2246_v13 = vor.u32 %v2486_v10, %v2245_v9 }
 0x390   :  { %v2310_v42 = vor.u32 %v2501_v11, %v2307_v12 }
 0x391   :  { %1307 = vmatpush.bf16.msra.mxu2 %v2246_v13 }
 0x392   :  { %1675 = vmatmul.bf16.gmra.mxu0 %v2310_v42 }
 0x395   :  { %1308 = vmatpush.bf16.msra.mxu2 %v2242_v44 }
 0x399   :  { %1309 = vmatpush.bf16.msra.mxu2 %v2238_v54 }
 0x39d   :  { %1310 = vmatpush.bf16.msra.mxu2 %v2234_v45 }
 0x3a1   :  { %1311 = vmatpush.bf16.msra.mxu2 %v2230_v19 }
 0x3a5   :  { %1312 = vmatpush.bf16.msra.mxu2 %v2226_v55 }
 0x3a9   :  { %1313 = vmatpush.bf16.msra.mxu2 %v2222_v24 }
 0x3ad   :  { %1314 = vmatpush.bf16.msra.mxu2 %v2218_v27 }
 0x3b0   :  { %1315 = vmatmul.bf16.vlgmr.msra.gmra.mxu2 %v2599_v28 }
 0x3c0   :  { %1320 = vmatmul.bf16.gmra.mxu2 %v2600_v29 }
 0x3d0   :  { %1325 = vmatmul.bf16.gmra.mxu2 %v2601_v30 }
 0x3e0   :  { %1330 = vmatmul.bf16.gmra.mxu2 %v2602_v31 }
 0x3f0   :  { %1335 = vmatmul.bf16.gmra.mxu2 %v2603_v32 }
 0x400   :  { %1340 = vmatmul.bf16.gmra.mxu2 %v2604_v33  ;;  %v1641_v33 = vpop.f32.mrf.mxu0 }
 0x410   :  { %1345 = vmatmul.bf16.gmra.mxu2 %v2605_v38  ;;  %v1643_v38 = vpop.f32.mrf.mxu0 }
 0x418   :  { %v1646_v39 = vpop.f32.mrf.mxu0 }
 0x420   :  { %1350 = vmatmul.bf16.gmra.mxu2 %v2606_v47  ;;  %v1648_v47 = vpop.f32.mrf.mxu0 }
 0x433   :  { %v1316_v49 = vpop.f32.mrf.mxu2 }
 0x434   :  { %v1356_v50 = vpack.c.bf16 %v1316_v49, %v1316_v49 }
 0x436   :  { %1372 = vst [vmem:[#allocation2] sm:$0xf] %v1356_v50 }
 0x43b   :  { %v1318_v51 = vpop.f32.mrf.mxu2 }
 0x43c   :  { %v1357_v56 = vpack.c.bf16 %v1318_v51, %v1318_v51 }
 0x43d   :  { %v2249_v58 = vld [vmem:[#allocation2] sm:$0xf] }
 0x43e   :  { %1373 = vst [vmem:[#allocation2 + $0x8] sm:$0xf] %v1357_v56  ;;  %v1651_v56 = vpop.f32.mrf.mxu0 }
 0x443   :  { %v1321_v57 = vpop.f32.mrf.mxu2 }
 0x444   :  { %v1358_v35 = vpack.c.bf16 %v1321_v57, %v1321_v57 }
 0x445   :  { %v2488_v59 = vld [vmem:[#allocation2 + $0x4] sm:$0xf0] }
 0x446   :  { %1374 = vst [vmem:[#allocation2 + $0x10] sm:$0xf] %v1358_v35  ;;  %v2250_v60 = vor.u32 %v2488_v59, %v2249_v58  ;;  %v1653_v59 = vpop.f32.mrf.mxu0 }
 0x448   :  { %1591 = vmatmul.bf16.vlgmr.msra.gmra.mxu3 %v2250_v60 }
 0x44b   :  { %v1323_v61 = vpop.f32.mrf.mxu2 }
 0x44c   :  { %v1359_v62 = vpack.c.bf16 %v1323_v61, %v1323_v61 }
 0x44d   :  { %v2257_v1 = vld [vmem:[#allocation2 + $0x10] sm:$0xf] }
 0x44e   :  { %1375 = vst [vmem:[#allocation2 + $0x18] sm:$0xf] %v1359_v62 }
 0x453   :  { %v1326_v63 = vpop.f32.mrf.mxu2 }
 0x454   :  { %v1360_v0 = vpack.c.bf16 %v1326_v63, %v1326_v63  ;;  %v1656_v63 = vpop.f32.mrf.mxu0 }
 0x455   :  { %v2490_v2 = vld [vmem:[#allocation2 + $0x14] sm:$0xf0] }
 0x456   :  { %1376 = vst [vmem:[#allocation2 + $0x20] sm:$0xf] %v1360_v0  ;;  %v2258_v3 = vor.u32 %v2490_v2, %v2257_v1 }
 0x458   :  { %1596 = vmatmul.bf16.gmra.mxu3 %v2258_v3 }
 0x45b   :  { %v1328_v4 = vpop.f32.mrf.mxu2 }
 0x45c   :  { %v1361_v5 = vpack.c.bf16 %v1328_v4, %v1328_v4 }
 0x45d   :  { %v2265_v8 = vld [vmem:[#allocation2 + $0x20] sm:$0xf] }
 0x45e   :  { %1377 = vst [vmem:[#allocation2 + $0x28] sm:$0xf] %v1361_v5  ;;  %v1658_v5 = vpop.f32.mrf.mxu0 }
 0x463   :  { %v1331_v6 = vpop.f32.mrf.mxu2 }
 0x464   :  { %v1362_v7 = vpack.c.bf16 %v1331_v6, %v1331_v6 }
 0x465   :  { %v2492_v9 = vld [vmem:[#allocation2 + $0x24] sm:$0xf0] }
 0x466   :  { %1378 = vst [vmem:[#allocation2 + $0x30] sm:$0xf] %v1362_v7  ;;  %v2266_v10 = vor.u32 %v2492_v9, %v2265_v8 }
 0x468   :  { %1601 = vmatmul.bf16.gmra.mxu3 %v2266_v10  ;;  %v1661_v10 = vpop.f32.mrf.mxu0 }
 0x46b   :  { %v1333_v11 = vpop.f32.mrf.mxu2 }
 0x46c   :  { %v1363_v12 = vpack.c.bf16 %v1333_v11, %v1333_v11 }
 0x46d   :  { %v2273_v52 = vld [vmem:[#allocation2 + $0x30] sm:$0xf] }
 0x46e   :  { %1379 = vst [vmem:[#allocation2 + $0x38] sm:$0xf] %v1363_v12 }
 0x473   :  { %v1336_v13 = vpop.f32.mrf.mxu2 }
 0x474   :  { %v1364_v42 = vpack.c.bf16 %v1336_v13, %v1336_v13 }
 0x475   :  { %v2494_v43 = vld [vmem:[#allocation2 + $0x34] sm:$0xf0] }
 0x476   :  { %1380 = vst [vmem:[#allocation2 + $0x40] sm:$0xf] %v1364_v42  ;;  %v2274_v44 = vor.u32 %v2494_v43, %v2273_v52  ;;  %v1663_v42 = vpop.f32.mrf.mxu0 }
 0x478   :  { %1606 = vmatmul.bf16.gmra.mxu3 %v2274_v44 }
 0x47b   :  { %v1338_v53 = vpop.f32.mrf.mxu2 }
 0x47c   :  { %v1365_v15 = vpack.c.bf16 %v1338_v53, %v1338_v53 }
 0x47d   :  { %v2281_v16 = vld [vmem:[#allocation2 + $0x40] sm:$0xf] }
 0x47e   :  { %1381 = vst [vmem:[#allocation2 + $0x48] sm:$0xf] %v1365_v15  ;;  %v1666_v53 = vpop.f32.mrf.mxu0 }
 0x483   :  { %v1341_v54 = vpop.f32.mrf.mxu2 }
 0x484   :  { %v1366_v14 = vpack.c.bf16 %v1341_v54, %v1341_v54 }
 0x485   :  { %v2496_v45 = vld [vmem:[#allocation2 + $0x44] sm:$0xf0] }
 0x486   :  { %1382 = vst [vmem:[#allocation2 + $0x50] sm:$0xf] %v1366_v14  ;;  %v2282_v17 = vor.u32 %v2496_v45, %v2281_v16 }
 0x488   :  { %1611 = vmatmul.bf16.gmra.mxu3 %v2282_v17  ;;  %v1668_v17 = vpop.f32.mrf.mxu0 }
 0x48b   :  { %v1343_v18 = vpop.f32.mrf.mxu2 }
 0x48c   :  { %v1367_v19 = vpack.c.bf16 %v1343_v18, %v1343_v18 }
 0x48d   :  { %v2289_v55 = vld [vmem:[#allocation2 + $0x50] sm:$0xf] }
 0x48e   :  { %1383 = vst [vmem:[#allocation2 + $0x58] sm:$0xf] %v1367_v19 }
 0x493   :  { %v1346_v20 = vpop.f32.mrf.mxu2 }
 0x494   :  { %v1368_v21 = vpack.c.bf16 %v1346_v20, %v1346_v20 }
 0x495   :  { %v2498_v22 = vld [vmem:[#allocation2 + $0x54] sm:$0xf0] }
 0x496   :  { %1384 = vst [vmem:[#allocation2 + $0x60] sm:$0xf] %v1368_v21  ;;  %v2290_v23 = vor.u32 %v2498_v22, %v2289_v55  ;;  %v1671_v55 = vpop.f32.mrf.mxu0 }
 0x498   :  { %1616 = vmatmul.bf16.gmra.mxu3 %v2290_v23 }
 0x49b   :  { %v1348_v24 = vpop.f32.mrf.mxu2 }
 0x49c   :  { %v1369_v25 = vpack.c.bf16 %v1348_v24, %v1348_v24 }
 0x49d   :  { %v2297_v28 = vld [vmem:[#allocation2 + $0x60] sm:$0xf] }
 0x49e   :  { %1385 = vst [vmem:[#allocation2 + $0x68] sm:$0xf] %v1369_v25  ;;  %v1673_v25 = vpop.f32.mrf.mxu0 }
 0x4a3   :  { %v1351_v26 = vpop.f32.mrf.mxu2 }
 0x4a4   :  { %v1370_v27 = vpack.c.bf16 %v1351_v26, %v1351_v26 }
 0x4a5   :  { %v2500_v29 = vld [vmem:[#allocation2 + $0x64] sm:$0xf0] }
 0x4a6   :  { %1386 = vst [vmem:[#allocation2 + $0x70] sm:$0xf] %v1370_v27  ;;  %v2298_v30 = vor.u32 %v2500_v29, %v2297_v28  ;;  %v1676_v29 = vpop.f32.mrf.mxu0 }
 0x4a8   :  { %1621 = vmatmul.bf16.gmra.mxu3 %v2298_v30 }
 0x4ab   :  { %v1353_v31 = vpop.f32.mrf.mxu2 }
 0x4ac   :  { %v1371_v32 = vpack.c.bf16 %v1353_v31, %v1353_v31 }
 0x4ad   :  { %v2305_v34 = vld [vmem:[#allocation2 + $0x70] sm:$0xf] }
 0x4ae   :  { %1387 = vst [vmem:[#allocation2 + $0x78] sm:$0xf] %v1371_v32 }
 0x4b5   :  { %v2502_v36 = vld [vmem:[#allocation2 + $0x74] sm:$0xf0] }
 0x4b6   :  { %v2306_v37 = vor.u32 %v2502_v36, %v2305_v34 }
 0x4b8   :  { %1626 = vmatmul.bf16.gmra.mxu3 %v2306_v37 }
 0x4cb   :  { %v1592_v41 = vpop.f32.mrf.mxu3 }
 0x4cc   :  { %v1593_v46 = vadd.f32 %v2915_v40, %v1592_v41 }
 0x4ce   :  { %v2918_v48 = vadd.f32 %v1641_v33, %v1593_v46 }
 0x4d0   :  { %1681 = vmax.xlane.f32.xlu0 %v2918_v48 }
 0x4d3   :  { %v1594_v49 = vpop.f32.mrf.mxu3 }
 0x4d4   :  { %v1595_v50 = vadd.f32 %v2915_v40, %v1594_v49 }
 0x4d6   :  { %v2922_v51 = vadd.f32 %v1643_v38, %v1595_v50  ;;  %v1678_v38 = vpop.f32.mrf.mxu0 }
 0x4d8   :  { %1683 = vmax.xlane.f32.xlu0 %v2922_v51 }
 0x4db   :  { %v1597_v57 = vpop.f32.mrf.mxu3 }
 0x4dc   :  { %v1598_v35 = vadd.f32 %v2915_v40, %v1597_v57 }
 0x4de   :  { %v2926_v58 = vadd.f32 %v1646_v39, %v1598_v35 }
 0x4e0   :  { %1685 = vmax.xlane.f32.xlu1 %v2926_v58 }
 0x4e3   :  { %v1599_v60 = vpop.f32.mrf.mxu3 }
 0x4e4   :  { %v1600_v61 = vadd.f32 %v2915_v40, %v1599_v60 }
 0x4e6   :  { %v2930_v62 = vadd.f32 %v1648_v47, %v1600_v61 }
 0x4e8   :  { %1687 = vmax.xlane.f32.xlu1 %v2930_v62 }
 0x4eb   :  { %v1602_v0 = vpop.f32.mrf.mxu3 }
 0x4ec   :  { %v1603_v1 = vadd.f32 %v2915_v40, %v1602_v0 }
 0x4ee   :  { %v2934_v2 = vadd.f32 %v1651_v56, %v1603_v1 }
 0x4f0   :  { %1689 = vmax.xlane.f32.xlu2 %v2934_v2 }
 0x4f3   :  { %v1604_v3 = vpop.f32.mrf.mxu3 }
 0x4f4   :  { %v1605_v4 = vadd.f32 %v2915_v40, %v1604_v3 }
 0x4f6   :  { %v2938_v6 = vadd.f32 %v1653_v59, %v1605_v4 }
 0x4f8   :  { %1691 = vmax.xlane.f32.xlu2 %v2938_v6 }
 0x4fb   :  { %v1607_v7 = vpop.f32.mrf.mxu3 }
 0x4fc   :  { %v1608_v8 = vadd.f32 %v2915_v40, %v1607_v7 }
 0x4fe   :  { %v2942_v9 = vadd.f32 %v1656_v63, %v1608_v8 }
 0x500   :  { %1693 = vmax.xlane.f32.xlu0 %v2942_v9 }
 0x503   :  { %v1609_v11 = vpop.f32.mrf.mxu3 }
 0x504   :  { %v1610_v12 = vadd.f32 %v2915_v40, %v1609_v11 }
 0x506   :  { %v2946_v13 = vadd.f32 %v1658_v5, %v1610_v12 }
 0x508   :  { %1695 = vmax.xlane.f32.xlu1 %v2946_v13 }
 0x50b   :  { %v1612_v52 = vpop.f32.mrf.mxu3 }
 0x50c   :  { %v1613_v43 = vadd.f32 %v2915_v40, %v1612_v52 }
 0x50e   :  { %v2950_v44 = vadd.f32 %v1661_v10, %v1613_v43 }
 0x510   :  { %1697 = vmax.xlane.f32.xlu2 %v2950_v44 }
 0x513   :  { %v1614_v15 = vpop.f32.mrf.mxu3 }
 0x514   :  { %v1615_v54 = vadd.f32 %v2915_v40, %v1614_v15 }
 0x516   :  { %v2954_v14 = vadd.f32 %v1663_v42, %v1615_v54 }
 0x518   :  { %1699 = vmax.xlane.f32.xlu0 %v2954_v14 }
 0x51b   :  { %v1617_v16 = vpop.f32.mrf.mxu3 }
 0x51c   :  { %v1618_v45 = vadd.f32 %v2915_v40, %v1617_v16 }
 0x51e   :  { %v2958_v18 = vadd.f32 %v1666_v53, %v1618_v45 }
 0x520   :  { %1701 = vmax.xlane.f32.xlu1 %v2958_v18 }
 0x523   :  { %v1619_v19 = vpop.f32.mrf.mxu3 }
 0x524   :  { %v1620_v20 = vadd.f32 %v2915_v40, %v1619_v19 }
 0x526   :  { %v2962_v21 = vadd.f32 %v1668_v17, %v1620_v20 }
 0x528   :  { %1703 = vmax.xlane.f32.xlu2 %v2962_v21 }
 0x52b   :  { %v1622_v22 = vpop.f32.mrf.mxu3 }
 0x52c   :  { %v1623_v23 = vadd.f32 %v2915_v40, %v1622_v22 }
 0x52e   :  { %v2966_v24 = vadd.f32 %v1671_v55, %v1623_v23 }
 0x530   :  { %1705 = vmax.xlane.f32.xlu0 %v2966_v24 }
 0x533   :  { %v1624_v26 = vpop.f32.mrf.mxu3 }
 0x534   :  { %v1625_v27 = vadd.f32 %v2915_v40, %v1624_v26 }
 0x536   :  { %v2970_v28 = vadd.f32 %v1673_v25, %v1625_v27 }
 0x538   :  { %1707 = vmax.xlane.f32.xlu1 %v2970_v28 }
 0x53b   :  { %v1627_v30 = vpop.f32.mrf.mxu3 }
 0x53c   :  { %v1628_v31 = vadd.f32 %v2915_v40, %v1627_v30 }
 0x53e   :  { %v2974_v32 = vadd.f32 %v1676_v29, %v1628_v31 }
 0x540   :  { %1709 = vmax.xlane.f32.xlu2 %v2974_v32 }
 0x543   :  { %v1682_v33 = vpop.xlane.xlu0 %1681  ;;  %v1629_v34 = vpop.f32.mrf.mxu3 }
 0x544   :  { %v2978_v36 = vsub.f32 %v2918_v48, %v1682_v33  ;;  %v1630_v37 = vadd.f32 %v2915_v40, %v1629_v34 }
 0x546   :  { %v1729_v39 = vmul.f32 1.442695, %v2978_v36  ;;  %v2982_v41 = vadd.f32 %v1678_v38, %v1630_v37 }
 0x548   :  { %2535 = vpow2.f32 %v1729_v39  ;;  %1711 = vmax.xlane.f32.xlu0 %v2982_v41 }
 0x54b   :  { %v1684_v46 = vpop.xlane.xlu0 %1683 }
 0x54c   :  { %v2986_v47 = vsub.f32 %v2922_v51, %v1684_v46 }
 0x54e   :  { %v2536_v49 = vpop.eup %2535  ;;  %v1731_v50 = vmul.f32 1.442695, %v2986_v47 }
 0x54f   :  { %1761 = vadd.xlane.f32.xlu1 %v2536_v49 }
 0x550   :  { %2537 = vpow2.f32 %v1731_v50 }
 0x553   :  { %v1686_v48 = vpop.xlane.xlu1 %1685 }
 0x554   :  { %v2990_v40 = vsub.f32 %v2926_v58, %v1686_v48 }
 0x556   :  { %v2538_v56 = vpop.eup %2537  ;;  %v1733_v57 = vmul.f32 1.442695, %v2990_v40 }
 0x557   :  { %1763 = vadd.xlane.f32.xlu2 %v2538_v56 }
 0x558   :  { %2539 = vpow2.f32 %v1733_v57 }
 0x55b   :  { %v1688_v35 = vpop.xlane.xlu1 %1687 }
 0x55c   :  { %v2994_v59 = vsub.f32 %v2930_v62, %v1688_v35 }
 0x55e   :  { %v2540_v51 = vpop.eup %2539  ;;  %v1735_v60 = vmul.f32 1.442695, %v2994_v59 }
 0x55f   :  { %1765 = vadd.xlane.f32.xlu0 %v2540_v51 }
 0x560   :  { %2541 = vpow2.f32 %v1735_v60 }
 0x563   :  { %v1690_v61 = vpop.xlane.xlu2 %1689 }
 0x564   :  { %v2998_v63 = vsub.f32 %v2934_v2, %v1690_v61 }
 0x566   :  { %v2542_v58 = vpop.eup %2541  ;;  %v1737_v0 = vmul.f32 1.442695, %v2998_v63 }
 0x567   :  { %1767 = vadd.xlane.f32.xlu1 %v2542_v58 }
 0x568   :  { %2543 = vpow2.f32 %v1737_v0 }
 0x56b   :  { %v1692_v1 = vpop.xlane.xlu2 %1691 }
 0x56c   :  { %v3002_v3 = vsub.f32 %v2938_v6, %v1692_v1 }
 0x56e   :  { %v2544_v62 = vpop.eup %2543  ;;  %v1739_v4 = vmul.f32 1.442695, %v3002_v3 }
 0x56f   :  { %1769 = vadd.xlane.f32.xlu2 %v2544_v62 }
 0x570   :  { %2545 = vpow2.f32 %v1739_v4 }
 0x573   :  { %v1694_v5 = vpop.xlane.xlu0 %1693 }
 0x574   :  { %v3006_v7 = vsub.f32 %v2942_v9, %v1694_v5 }
 0x576   :  { %v2546_v2 = vpop.eup %2545  ;;  %v1741_v8 = vmul.f32 1.442695, %v3006_v7 }
 0x577   :  { %1771 = vadd.xlane.f32.xlu0 %v2546_v2 }
 0x578   :  { %2547 = vpow2.f32 %v1741_v8 }
 0x57b   :  { %v1696_v10 = vpop.xlane.xlu1 %1695 }
 0x57c   :  { %v3010_v11 = vsub.f32 %v2946_v13, %v1696_v10 }
 0x57e   :  { %v2548_v6 = vpop.eup %2547  ;;  %v1743_v12 = vmul.f32 1.442695, %v3010_v11 }
 0x57f   :  { %1773 = vadd.xlane.f32.xlu1 %v2548_v6 }
 0x580   :  { %2549 = vpow2.f32 %v1743_v12 }
 0x583   :  { %v1698_v42 = vpop.xlane.xlu2 %1697 }
 0x584   :  { %v3014_v52 = vsub.f32 %v2950_v44, %v1698_v42 }
 0x586   :  { %v2550_v9 = vpop.eup %2549  ;;  %v1745_v43 = vmul.f32 1.442695, %v3014_v52 }
 0x587   :  { %1775 = vadd.xlane.f32.xlu2 %v2550_v9 }
 0x588   :  { %2551 = vpow2.f32 %v1745_v43 }
 0x58b   :  { %v1700_v53 = vpop.xlane.xlu0 %1699 }
 0x58c   :  { %v3018_v15 = vsub.f32 %v2954_v14, %v1700_v53 }
 0x58e   :  { %v2552_v13 = vpop.eup %2551  ;;  %v1747_v54 = vmul.f32 1.442695, %v3018_v15 }
 0x58f   :  { %1777 = vadd.xlane.f32.xlu0 %v2552_v13 }
 0x590   :  { %2553 = vpow2.f32 %v1747_v54 }
 0x593   :  { %v1702_v16 = vpop.xlane.xlu1 %1701 }
 0x594   :  { %v3022_v45 = vsub.f32 %v2958_v18, %v1702_v16 }
 0x596   :  { %v2554_v44 = vpop.eup %2553  ;;  %v1749_v17 = vmul.f32 1.442695, %v3022_v45 }
 0x597   :  { %1779 = vadd.xlane.f32.xlu1 %v2554_v44 }
 0x598   :  { %2555 = vpow2.f32 %v1749_v17 }
 0x59b   :  { %v1704_v19 = vpop.xlane.xlu2 %1703 }
 0x59c   :  { %v3026_v20 = vsub.f32 %v2962_v21, %v1704_v19 }
 0x59e   :  { %v2556_v14 = vpop.eup %2555  ;;  %v1751_v55 = vmul.f32 1.442695, %v3026_v20 }
 0x59f   :  { %1781 = vadd.xlane.f32.xlu2 %v2556_v14 }
 0x5a0   :  { %2557 = vpow2.f32 %v1751_v55 }
 0x5a3   :  { %v1706_v22 = vpop.xlane.xlu0 %1705 }
 0x5a4   :  { %v3030_v23 = vsub.f32 %v2966_v24, %v1706_v22 }
 0x5a6   :  { %v2558_v18 = vpop.eup %2557  ;;  %v1753_v25 = vmul.f32 1.442695, %v3030_v23 }
 0x5a7   :  { %1783 = vadd.xlane.f32.xlu0 %v2558_v18 }
 0x5a8   :  { %2559 = vpow2.f32 %v1753_v25 }
 0x5ab   :  { %v1708_v26 = vpop.xlane.xlu1 %1707 }
 0x5ac   :  { %v3034_v27 = vsub.f32 %v2970_v28, %v1708_v26 }
 0x5ae   :  { %v2560_v21 = vpop.eup %2559  ;;  %v1755_v29 = vmul.f32 1.442695, %v3034_v27 }
 0x5af   :  { %1785 = vadd.xlane.f32.xlu1 %v2560_v21 }
 0x5b0   :  { %2561 = vpow2.f32 %v1755_v29 }
 0x5b3   :  { %v1710_v30 = vpop.xlane.xlu2 %1709 }
 0x5b4   :  { %v3038_v31 = vsub.f32 %v2974_v32, %v1710_v30 }
 0x5b6   :  { %v2562_v24 = vpop.eup %2561  ;;  %v1757_v33 = vmul.f32 1.442695, %v3038_v31 }
 0x5b7   :  { %1787 = vadd.xlane.f32.xlu2 %v2562_v24 }
 0x5b8   :  { %2563 = vpow2.f32 %v1757_v33 }
 0x5bb   :  { %v1712_v34 = vpop.xlane.xlu0 %1711 }
 0x5bc   :  { %v3042_v37 = vsub.f32 %v2982_v41, %v1712_v34 }
 0x5be   :  { %v2564_v28 = vpop.eup %2563  ;;  %v1759_v38 = vmul.f32 1.442695, %v3042_v37 }
 0x5bf   :  { %1789 = vadd.xlane.f32.xlu0 %v2564_v28 }
 0x5c0   :  { %2565 = vpow2.f32 %v1759_v38 }
 0x5c2   :  { %v1762_v39 = vpop.xlane.xlu1 %1761 }
 0x5c3   :  { %2567 = vlog2.f32 %v1762_v39 }
 0x5c6   :  { %v2566_v46 = vpop.eup %2565 }
 0x5c7   :  { %1791 = vadd.xlane.f32.xlu1 %v2566_v46 }
 0x5c9   :  { %v2568_v32 = vpop.eup %2567 }
 0x5ca   :  { %v1794_v49 = vmul.f32 0.6931472, %v2568_v32  ;;  %v1764_v50 = vpop.xlane.xlu2 %1763 }
 0x5cb   :  { %2569 = vlog2.f32 %v1764_v50 }
 0x5cc   :  { %v1825_v48 = vsub.f32 %v2978_v36, %v1794_v49 }
 0x5ce   :  { %1841 = vst [vmem:[%s3117_s8] sm:$0xff] %v1825_v48 }
 0x5d1   :  { %v2570_v41 = vpop.eup %2569 }
 0x5d2   :  { %v1796_v56 = vmul.f32 0.6931472, %v2570_v41  ;;  %v1766_v57 = vpop.xlane.xlu0 %1765 }
 0x5d3   :  { %2571 = vlog2.f32 %v1766_v57 }
 0x5d4   :  { %v1826_v35 = vsub.f32 %v2986_v47, %v1796_v56 }
 0x5d6   :  { %1842 = vst [vmem:[%s3117_s8 + $0x8] sm:$0xff] %v1826_v35 }
 0x5d9   :  { %v2572_v51 = vpop.eup %2571 }
 0x5da   :  { %v1798_v60 = vmul.f32 0.6931472, %v2572_v51  ;;  %v1768_v61 = vpop.xlane.xlu1 %1767 }
 0x5db   :  { %2573 = vlog2.f32 %v1768_v61 }
 0x5dc   :  { %v1827_v36 = vsub.f32 %v2990_v40, %v1798_v60 }
 0x5de   :  { %1843 = vst [vmem:[%s3117_s8 + $0x10] sm:$0xff] %v1827_v36 }
 0x5e1   :  { %v2574_v58 = vpop.eup %2573 }
 0x5e2   :  { %v1800_v0 = vmul.f32 0.6931472, %v2574_v58  ;;  %v1770_v1 = vpop.xlane.xlu2 %1769 }
 0x5e3   :  { %2575 = vlog2.f32 %v1770_v1 }
 0x5e4   :  { %v1828_v47 = vsub.f32 %v2994_v59, %v1800_v0 }
 0x5e6   :  { %1844 = vst [vmem:[%s3117_s8 + $0x18] sm:$0xff] %v1828_v47 }
 0x5e9   :  { %v2576_v62 = vpop.eup %2575 }
 0x5ea   :  { %v1802_v4 = vmul.f32 0.6931472, %v2576_v62  ;;  %v1772_v5 = vpop.xlane.xlu0 %1771 }
 0x5eb   :  { %2577 = vlog2.f32 %v1772_v5 }
 0x5ec   :  { %v1829_v40 = vsub.f32 %v2998_v63, %v1802_v4 }
 0x5ee   :  { %1845 = vst [vmem:[%s3117_s8 + $0x20] sm:$0xff] %v1829_v40 }
 0x5f1   :  { %v2578_v2 = vpop.eup %2577 }
 0x5f2   :  { %v1804_v8 = vmul.f32 0.6931472, %v2578_v2  ;;  %v1774_v10 = vpop.xlane.xlu1 %1773 }
 0x5f3   :  { %2579 = vlog2.f32 %v1774_v10 }
 0x5f4   :  { %v1830_v59 = vsub.f32 %v3002_v3, %v1804_v8 }
 0x5f6   :  { %1846 = vst [vmem:[%s3117_s8 + $0x28] sm:$0xff] %v1830_v59 }
 0x5f9   :  { %v2580_v6 = vpop.eup %2579 }
 0x5fa   :  { %v1806_v12 = vmul.f32 0.6931472, %v2580_v6  ;;  %v1776_v42 = vpop.xlane.xlu2 %1775 }
 0x5fb   :  { %2581 = vlog2.f32 %v1776_v42 }
 0x5fc   :  { %v1831_v63 = vsub.f32 %v3006_v7, %v1806_v12 }
 0x5fe   :  { %1847 = vst [vmem:[%s3117_s8 + $0x30] sm:$0xff] %v1831_v63 }
 0x601   :  { %v2582_v9 = vpop.eup %2581 }
 0x602   :  { %v1808_v43 = vmul.f32 0.6931472, %v2582_v9  ;;  %v1778_v53 = vpop.xlane.xlu0 %1777 }
 0x603   :  { %2583 = vlog2.f32 %v1778_v53 }
 0x604   :  { %v1832_v3 = vsub.f32 %v3010_v11, %v1808_v43 }
 0x606   :  { %1848 = vst [vmem:[%s3117_s8 + $0x38] sm:$0xff] %v1832_v3 }
 0x609   :  { %v2584_v13 = vpop.eup %2583 }
 0x60a   :  { %v1810_v54 = vmul.f32 0.6931472, %v2584_v13  ;;  %v1780_v16 = vpop.xlane.xlu1 %1779 }
 0x60b   :  { %2585 = vlog2.f32 %v1780_v16 }
 0x60c   :  { %v1833_v7 = vsub.f32 %v3014_v52, %v1810_v54 }
 0x60e   :  { %1849 = vst [vmem:[%s3117_s8 + $0x40] sm:$0xff] %v1833_v7 }
 0x611   :  { %v2586_v44 = vpop.eup %2585 }
 0x612   :  { %v1812_v17 = vmul.f32 0.6931472, %v2586_v44  ;;  %v1782_v19 = vpop.xlane.xlu2 %1781 }
 0x613   :  { %2587 = vlog2.f32 %v1782_v19 }
 0x614   :  { %v1834_v11 = vsub.f32 %v3018_v15, %v1812_v17 }
 0x616   :  { %1850 = vst [vmem:[%s3117_s8 + $0x48] sm:$0xff] %v1834_v11 }
 0x619   :  { %v2588_v14 = vpop.eup %2587 }
 0x61a   :  { %v1814_v55 = vmul.f32 0.6931472, %v2588_v14  ;;  %v1784_v22 = vpop.xlane.xlu0 %1783 }
 0x61b   :  { %2589 = vlog2.f32 %v1784_v22 }
 0x61c   :  { %v1835_v52 = vsub.f32 %v3022_v45, %v1814_v55 }
 0x61e   :  { %1851 = vst [vmem:[%s3117_s8 + $0x50] sm:$0xff] %v1835_v52 }
 0x621   :  { %v2590_v18 = vpop.eup %2589 }
 0x622   :  { %v1816_v25 = vmul.f32 0.6931472, %v2590_v18  ;;  %v1786_v26 = vpop.xlane.xlu1 %1785 }
 0x623   :  { %2591 = vlog2.f32 %v1786_v26 }
 0x624   :  { %v1836_v15 = vsub.f32 %v3026_v20, %v1816_v25 }
 0x626   :  { %1852 = vst [vmem:[%s3117_s8 + $0x58] sm:$0xff] %v1836_v15 }
 0x629   :  { %v2592_v21 = vpop.eup %2591 }
 0x62a   :  { %v1818_v29 = vmul.f32 0.6931472, %v2592_v21  ;;  %v1788_v30 = vpop.xlane.xlu2 %1787 }
 0x62b   :  { %2593 = vlog2.f32 %v1788_v30 }
 0x62c   :  { %v1837_v45 = vsub.f32 %v3030_v23, %v1818_v29 }
 0x62e   :  { %1853 = vst [vmem:[%s3117_s8 + $0x60] sm:$0xff] %v1837_v45 }
 0x631   :  { %v2594_v24 = vpop.eup %2593 }
 0x632   :  { %v1820_v33 = vmul.f32 0.6931472, %v2594_v24  ;;  %v1790_v34 = vpop.xlane.xlu0 %1789 }
 0x633   :  { %2595 = vlog2.f32 %v1790_v34 }
 0x634   :  { %v1838_v20 = vsub.f32 %v3034_v27, %v1820_v33 }
 0x636   :  { %1854 = vst [vmem:[%s3117_s8 + $0x68] sm:$0xff] %v1838_v20 }
 0x639   :  { %v2596_v28 = vpop.eup %2595 }
 0x63a   :  { %v1822_v38 = vmul.f32 0.6931472, %v2596_v28  ;;  %v1792_v39 = vpop.xlane.xlu1 %1791 }
 0x63b   :  { %2597 = vlog2.f32 %v1792_v39 }
 0x63c   :  { %v1839_v23 = vsub.f32 %v3038_v31, %v1822_v38 }
 0x63e   :  { %1855 = vst [vmem:[%s3117_s8 + $0x70] sm:$0xff] %v1839_v23 }
 0x641   :  { %v2598_v46 = vpop.eup %2597 }
 0x642   :  { %v1824_v32 = vmul.f32 0.6931472, %v2598_v46 }
 0x644   :  { %v1840_v49 = vsub.f32 %v3042_v37, %v1824_v32 }
 0x646   :  { %1856 = vst [vmem:[%s3117_s8 + $0x78] sm:$0xff] %v1840_v49 }
 0x647   :  { %1861 = vsyncpa [#allocation4], 1 }
 0x648   :  { %1862 = vsyncpa [#allocation6], 1 }

</bundles_post_ra>
